<compile_context>
chip_gen: v7x
topology: tpu7x:2x2x1
jax: 0.10.0
libtpu: 0.0.40
codegen_flags: <defaults>
</compile_context>

<pallas_src>
import functools

import jax
import jax.numpy as jnp
from jax.experimental import pallas as pl
from jax.experimental.pallas import tpu as pltpu


# ----------------------------- Pallas kernel --------------------------------
def embedding_block_kernel(ti_ref, tj_ref, rbf_ref,
                           w_rbf_ref, b_rbf_ref,
                           ew_ref, w3_ref, b_lin_ref,
                           o_ref):
    """One edge-tile of the EmbeddingBlock forward.

    ti_ref, tj_ref : (TE, 1)  int32 atom types of the two edge endpoints
    rbf_ref        : (TE, R)  radial basis features (compute dtype, e.g. bf16)
    w_rbf_ref      : (R, H)   lin_rbf.weight^T
    b_rbf_ref      : (1, H)   lin_rbf.bias (f32)
    ew_ref         : (2C, H)  [emb_pad @ W1 ; emb_pad @ W2]  (C = padded #types)
    w3_ref         : (H, H)   third H-block of lin.weight^T
    b_lin_ref      : (1, H)   lin.bias (f32)
    o_ref          : (TE, H)  output
    """
    te = rbf_ref.shape[0]
    two_c = ew_ref.shape[0]
    c = two_c // 2

    # ---- rbf branch: act(lin_rbf(rbf)) — f32 accumulate, f32 activation ----
    h = jnp.dot(rbf_ref[...], w_rbf_ref[...],
                preferred_element_type=jnp.float32)
    h = h + b_rbf_ref[...].astype(jnp.float32)
    h = h * jax.nn.sigmoid(h)                       # SiLU

    # ---- fused embedding-gather + first 2 H-blocks of `lin` ----------------
    # One-hot over 2C lanes: lanes [0, C) select type(i), [C, 2C) select type(j).
    # (atom types < 100 < C, so the two halves never collide.)
    lane = jax.lax.broadcasted_iota(jnp.int32, (te, two_c), 1)
    hot = jnp.logical_or(lane == ti_ref[...], lane == (tj_ref[...] + c))
    onehot = jnp.where(hot, 1.0, 0.0).astype(ew_ref.dtype)

    # cat([x_i, x_j, h_rbf]) @ lin.W^T  ==  onehot @ EW + h_rbf @ W3 + b
    acc = jnp.dot(onehot, ew_ref[...], preferred_element_type=jnp.float32)
    acc = acc + jnp.dot(h.astype(w3_ref.dtype), w3_ref[...],
                        preferred_element_type=jnp.float32)
    acc = acc + b_lin_ref[...].astype(jnp.float32)

    o_ref[...] = (acc * jax.nn.sigmoid(acc)).astype(o_ref.dtype)   # SiLU


# ------------------------------ wrapper --------------------------------------
@functools.partial(jax.jit,
                   static_argnames=("tile_e", "compute_dtype", "out_dtype"))
def embedding_block_forward(params, x, rbf, i, j, *,
                            tile_e=1024,
                            compute_dtype=jnp.bfloat16,
                            out_dtype=jnp.bfloat16):
    """params: dict of weights (see init_params). x: int atom types [A].
    rbf: [E, R]. i, j: int edge endpoint indices [E]. Returns [E, H]."""
    emb = params["atom_type_emb"]                  # [T, H]
    num_types, H = emb.shape
    E, R = rbf.shape
    C = ((num_types + 127) // 128) * 128           # pad class axis to 128

    # Fold embedding lookup + first two H-blocks of `lin` into one table.
    w_lin_t = params["lin_w"].T                    # [3H, H]
    w1 = w_lin_t[0 * H:1 * H, :]
    w2 = w_lin_t[1 * H:2 * H, :]
    w3 = w_lin_t[2 * H:3 * H, :]
    emb_pad = jnp.pad(emb, ((0, C - num_types), (0, 0)))
    ew = jnp.concatenate([emb_pad @ w1, emb_pad @ w2],
                         axis=0).astype(compute_dtype)        # [2C, H]
    w3c = w3.astype(compute_dtype)                            # [H, H]
    w_rbf = params["lin_rbf_w"].T.astype(compute_dtype)       # [R, H]
    b_rbf = params["lin_rbf_b"][None, :].astype(jnp.float32)  # [1, H]
    b_lin = params["lin_b"][None, :].astype(jnp.float32)      # [1, H]

    # Per-edge atom types: tiny int32 gathers (no [E,H] HBM materialization).
    ti = jnp.take(x, i).astype(jnp.int32)[:, None]            # [E, 1]
    tj = jnp.take(x, j).astype(jnp.int32)[:, None]            # [E, 1]
    rbf_c = rbf.astype(compute_dtype)                         # [E, R]

    # Edge tile: large, multiple of 8, <= E (ragged last tile is masked).
    tile = max(8, (min(tile_e, E) // 8) * 8)
    E_arr = E
    if E < tile:                                   # only possible when E < 8
        pad = tile - E
        rbf_c = jnp.pad(rbf_c, ((0, pad), (0, 0)))
        ti = jnp.pad(ti, ((0, pad), (0, 0)))
        tj = jnp.pad(tj, ((0, pad), (0, 0)))
        E_arr = tile

    grid = (pl.cdiv(E_arr, tile),)
    edge = lambda w: pl.BlockSpec((tile, w), lambda e: (e, 0))
    full = lambda shp: pl.BlockSpec(shp, lambda e: (0, 0))

    out = pl.pallas_call(
        embedding_block_kernel,
        out_shape=jax.ShapeDtypeStruct((E_arr, H), out_dtype),
        grid_spec=pltpu.PrefetchScalarGridSpec(
            num_scalar_prefetch=0,
            grid=grid,
            in_specs=[
                edge(1),             # ti
                edge(1),             # tj
                edge(R),             # rbf
                full((R, H)),        # w_rbf
                full((1, H)),        # b_rbf
                full((2 * C, H)),    # ew = [emb@W1 ; emb@W2]
                full((H, H)),        # w3
                full((1, H)),        # b_lin
            ],
            out_specs=edge(H),
        ),
        compiler_params=pltpu.CompilerParams(
            dimension_semantics=("parallel",)),
    )(ti, tj, rbf_c, w_rbf, b_rbf, ew, w3c, b_lin)

    return out[:E]


# -------------------------- deterministic params ------------------------------
def init_params(key, num_radial, hidden_channels):
    k0, k1, k2, k3, k4 = jax.random.split(key, 5)
    # nn.Embedding default: N(0, 1)
    emb = jax.random.normal(k0, (100, hidden_channels), jnp.float32)
    # nn.Linear default: U(-1/sqrt(fan_in), 1/sqrt(fan_in))
    lim_rbf = 1.0 / jnp.sqrt(jnp.float32(num_radial))
    lin_rbf_w = jax.random.uniform(k1, (hidden_channels, num_radial),
                                   jnp.float32, -lim_rbf, lim_rbf)
    lin_rbf_b = jax.random.uniform(k2, (hidden_channels,),
                                   jnp.float32, -lim_rbf, lim_rbf)
    lim_lin = 1.0 / jnp.sqrt(jnp.float32(3 * hidden_channels))
    lin_w = jax.random.uniform(k3, (hidden_channels, 3 * hidden_channels),
                               jnp.float32, -lim_lin, lim_lin)
    lin_b = jax.random.uniform(k4, (hidden_channels,),
                               jnp.float32, -lim_lin, lim_lin)
    return {
        "atom_type_emb": emb,
        "lin_rbf_w": lin_rbf_w, "lin_rbf_b": lin_rbf_b,
        "lin_w": lin_w, "lin_b": lin_b,
    }


def reference_forward(params, x, rbf, i, j):
    """Pure-JAX f32 reference mirroring the PyTorch forward (SiLU activation)."""
    emb = jnp.take(params["atom_type_emb"], x, axis=0)
    h_rbf = jax.nn.silu(rbf @ params["lin_rbf_w"].T + params["lin_rbf_b"])
    cat = jnp.concatenate([emb[i], emb[j], h_rbf], axis=-1)
    return jax.nn.silu(cat @ params["lin_w"].T + params["lin_b"])


# --------------------------------- main ---------------------------------------
if __name__ == "__main__":
    num_radial = 8
    hidden_channels = 128     # lane-dense output (multiple of 128)
    num_atoms = 24
    num_edges = 300           # not a multiple of 8 or of the edge tile

    key = jax.random.PRNGKey(0)
    kp, kx, kr, ki, kj = jax.random.split(key, 5)

    params = init_params(kp, num_radial, hidden_channels)
    x = jax.random.randint(kx, (num_atoms,), 0, 100, dtype=jnp.int32)
    rbf = jax.random.normal(kr, (num_edges, num_radial), jnp.float32)
    i_idx = jax.random.randint(ki, (num_edges,), 0, num_atoms, dtype=jnp.int32)
    j_idx = jax.random.randint(kj, (num_edges,), 0, num_atoms, dtype=jnp.int32)

    out = embedding_block_forward(params, x, rbf, i_idx, j_idx)
    out = jax.block_until_ready(out)

    ref = reference_forward(params, x, rbf, i_idx, j_idx)
    assert out.shape == (num_edges, hidden_channels)
    err = float(jnp.max(jnp.abs(out.astype(jnp.float32) - ref)))
    # bf16 matmul operands + bf16 output vs f32 reference -> loose tolerance.
    assert err < 5e-2, f"mismatch vs reference: max abs err {err}"

    print("KERNEL_OK")
</pallas_src>

<mosaic_0001>
module attributes {stable_mosaic.version = 11 : i64} {
  func.func @embedding_block_kernel(%arg0: i32, %arg1: memref<296x1xi32, #tpu.memory_space<vmem>>, %arg2: memref<296x1xi32, #tpu.memory_space<vmem>>, %arg3: memref<296x8xbf16, #tpu.memory_space<vmem>>, %arg4: memref<8x128xbf16, #tpu.memory_space<vmem>>, %arg5: memref<1x128xf32, #tpu.memory_space<vmem>>, %arg6: memref<256x128xbf16, #tpu.memory_space<vmem>>, %arg7: memref<128x128xbf16, #tpu.memory_space<vmem>>, %arg8: memref<1x128xf32, #tpu.memory_space<vmem>>, %arg9: memref<296x128xbf16, #tpu.memory_space<vmem>>) attributes {dimension_semantics = [#tpu.dimension_semantics<parallel>], iteration_bounds = array<i64: 2>, scalar_prefetch = 0 : i64, scratch_operands = 0 : i64, tpu.core_type = #tpu.core_type<tc>, window_params = [{transform_indices = @transform_0, window_bounds = array<i64: 296, 1>}, {transform_indices = @transform_1, window_bounds = array<i64: 296, 1>}, {transform_indices = @transform_2, window_bounds = array<i64: 296, 8>}, {pipeline_mode = #tpu.pipeline_mode<synchronous>, transform_indices = @transform_3, window_bounds = array<i64: 8, 128>}, {pipeline_mode = #tpu.pipeline_mode<synchronous>, transform_indices = @transform_4, window_bounds = array<i64: 1, 128>}, {pipeline_mode = #tpu.pipeline_mode<synchronous>, transform_indices = @transform_5, window_bounds = array<i64: 256, 128>}, {pipeline_mode = #tpu.pipeline_mode<synchronous>, transform_indices = @transform_6, window_bounds = array<i64: 128, 128>}, {pipeline_mode = #tpu.pipeline_mode<synchronous>, transform_indices = @transform_7, window_bounds = array<i64: 1, 128>}, {transform_indices = @transform_8, window_bounds = array<i64: 296, 128>}]} {
    %c0 = arith.constant 0 : index
    %c0_0 = arith.constant 0 : index
    %0 = vector.load %arg3[%c0, %c0_0] : memref<296x8xbf16, #tpu.memory_space<vmem>>, vector<296x8xbf16>
    %c0_1 = arith.constant 0 : index
    %c0_2 = arith.constant 0 : index
    %1 = vector.load %arg4[%c0_1, %c0_2] : memref<8x128xbf16, #tpu.memory_space<vmem>>, vector<8x128xbf16>
    %cst = arith.constant dense<0.000000e+00> : vector<296x128xf32>
    %2 = tpu.matmul %0, %1, %cst {dimension_numbers = #tpu.dot_dimension_numbers<[1], [0], [0], [1], [0, 0, 1, 1], [], []>} : vector<296x8xbf16>, vector<8x128xbf16>, vector<296x128xf32> -> vector<296x128xf32>
    %c0_3 = arith.constant 0 : index
    %c0_4 = arith.constant 0 : index
    %3 = vector.load %arg5[%c0_3, %c0_4] : memref<1x128xf32, #tpu.memory_space<vmem>>, vector<1x128xf32>
    %4 = vector.broadcast %3 : vector<1x128xf32> to vector<296x128xf32>
    %5 = arith.addf %2, %4 : vector<296x128xf32>
    %6 = arith.negf %5 : vector<296x128xf32>
    %7 = math.exp %6 : vector<296x128xf32>
    %cst_5 = arith.constant 1.000000e+00 : f32
    %8 = vector.broadcast %cst_5 : f32 to vector<296x128xf32>
    %9 = arith.addf %8, %7 : vector<296x128xf32>
    %10 = arith.divf %8, %9 : vector<296x128xf32>
    %11 = arith.mulf %5, %10 : vector<296x128xf32>
    %12 = tpu.iota {dimensions = array<i32: 1>} : vector<296x256xi32>
    %c0_6 = arith.constant 0 : index
    %c0_7 = arith.constant 0 : index
    %13 = vector.load %arg1[%c0_6, %c0_7] : memref<296x1xi32, #tpu.memory_space<vmem>>, vector<296x1xi32>
    %14 = vector.broadcast %13 : vector<296x1xi32> to vector<296x256xi32>
    %15 = arith.cmpi eq, %12, %14 : vector<296x256xi32>
    %c0_8 = arith.constant 0 : index
    %c0_9 = arith.constant 0 : index
    %16 = vector.load %arg2[%c0_8, %c0_9] : memref<296x1xi32, #tpu.memory_space<vmem>>, vector<296x1xi32>
    %c128_i32 = arith.constant 128 : i32
    %17 = vector.broadcast %c128_i32 : i32 to vector<296x1xi32>
    %18 = arith.addi %16, %17 : vector<296x1xi32>
    %19 = vector.broadcast %18 : vector<296x1xi32> to vector<296x256xi32>
    %20 = arith.cmpi eq, %12, %19 : vector<296x256xi32>
    %21 = arith.ori %15, %20 : vector<296x256xi1>
    %cst_10 = arith.constant 1.000000e+00 : f32
    %cst_11 = arith.constant 0.000000e+00 : f32
    %22 = vector.broadcast %cst_10 : f32 to vector<296x256xf32>
    %23 = vector.broadcast %cst_11 : f32 to vector<296x256xf32>
    %24 = arith.select %21, %22, %23 : vector<296x256xi1>, vector<296x256xf32>
    %25 = arith.truncf %24 : vector<296x256xf32> to vector<296x256xbf16>
    %c0_12 = arith.constant 0 : index
    %c0_13 = arith.constant 0 : index
    %26 = vector.load %arg6[%c0_12, %c0_13] : memref<256x128xbf16, #tpu.memory_space<vmem>>, vector<256x128xbf16>
    %cst_14 = arith.constant dense<0.000000e+00> : vector<296x128xf32>
    %27 = tpu.matmul %25, %26, %cst_14 {dimension_numbers = #tpu.dot_dimension_numbers<[1], [0], [0], [1], [0, 0, 1, 1], [], []>} : vector<296x256xbf16>, vector<256x128xbf16>, vector<296x128xf32> -> vector<296x128xf32>
    %28 = arith.truncf %11 : vector<296x128xf32> to vector<296x128xbf16>
    %c0_15 = arith.constant 0 : index
    %c0_16 = arith.constant 0 : index
    %29 = vector.load %arg7[%c0_15, %c0_16] : memref<128x128xbf16, #tpu.memory_space<vmem>>, vector<128x128xbf16>
    %cst_17 = arith.constant dense<0.000000e+00> : vector<296x128xf32>
    %30 = tpu.matmul %28, %29, %cst_17 {dimension_numbers = #tpu.dot_dimension_numbers<[1], [0], [0], [1], [0, 0, 1, 1], [], []>} : vector<296x128xbf16>, vector<128x128xbf16>, vector<296x128xf32> -> vector<296x128xf32>
    %31 = arith.addf %27, %30 : vector<296x128xf32>
    %c0_18 = arith.constant 0 : index
    %c0_19 = arith.constant 0 : index
    %32 = vector.load %arg8[%c0_18, %c0_19] : memref<1x128xf32, #tpu.memory_space<vmem>>, vector<1x128xf32>
    %33 = vector.broadcast %32 : vector<1x128xf32> to vector<296x128xf32>
    %34 = arith.addf %31, %33 : vector<296x128xf32>
    %35 = arith.negf %34 : vector<296x128xf32>
    %36 = math.exp %35 : vector<296x128xf32>
    %cst_20 = arith.constant 1.000000e+00 : f32
    %37 = vector.broadcast %cst_20 : f32 to vector<296x128xf32>
    %38 = arith.addf %37, %36 : vector<296x128xf32>
    %39 = arith.divf %37, %38 : vector<296x128xf32>
    %40 = arith.mulf %34, %39 : vector<296x128xf32>
    %41 = arith.truncf %40 : vector<296x128xf32> to vector<296x128xbf16>
    %c0_21 = arith.constant 0 : index
    %c0_22 = arith.constant 0 : index
    %42 = vector.load %arg9[%c0_21, %c0_22] : memref<296x128xbf16, #tpu.memory_space<vmem>>, vector<296x128xbf16>
    tpu.vector_store %arg9[%c0_21, %c0_22], %41 {strides = array<i32>} : memref<296x128xbf16, #tpu.memory_space<vmem>>, vector<296x128xbf16>,
    return
  }
  func.func @transform_0(%arg0: i32) -> (i32, i32) {
    %c0_i32 = arith.constant 0 : i32
    %c0_i32_0 = arith.constant 0 : i32
    return %arg0, %c0_i32 : i32, i32
  }
  func.func @transform_1(%arg0: i32) -> (i32, i32) {
    %c0_i32 = arith.constant 0 : i32
    %c0_i32_0 = arith.constant 0 : i32
    return %arg0, %c0_i32 : i32, i32
  }
  func.func @transform_2(%arg0: i32) -> (i32, i32) {
    %c0_i32 = arith.constant 0 : i32
    %c0_i32_0 = arith.constant 0 : i32
    return %arg0, %c0_i32 : i32, i32
  }
  func.func @transform_3(%arg0: i32) -> (i32, i32) {
    %c0_i32 = arith.constant 0 : i32
    %c0_i32_0 = arith.constant 0 : i32
    %c0_i32_1 = arith.constant 0 : i32
    return %c0_i32, %c0_i32_0 : i32, i32
  }
  func.func @transform_4(%arg0: i32) -> (i32, i32) {
    %c0_i32 = arith.constant 0 : i32
    %c0_i32_0 = arith.constant 0 : i32
    %c0_i32_1 = arith.constant 0 : i32
    return %c0_i32, %c0_i32_0 : i32, i32
  }
  func.func @transform_5(%arg0: i32) -> (i32, i32) {
    %c0_i32 = arith.constant 0 : i32
    %c0_i32_0 = arith.constant 0 : i32
    %c0_i32_1 = arith.constant 0 : i32
    return %c0_i32, %c0_i32_0 : i32, i32
  }
  func.func @transform_6(%arg0: i32) -> (i32, i32) {
    %c0_i32 = arith.constant 0 : i32
    %c0_i32_0 = arith.constant 0 : i32
    %c0_i32_1 = arith.constant 0 : i32
    return %c0_i32, %c0_i32_0 : i32, i32
  }
  func.func @transform_7(%arg0: i32) -> (i32, i32) {
    %c0_i32 = arith.constant 0 : i32
    %c0_i32_0 = arith.constant 0 : i32
    %c0_i32_1 = arith.constant 0 : i32
    return %c0_i32, %c0_i32_0 : i32, i32
  }
  func.func @transform_8(%arg0: i32) -> (i32, i32) {
    %c0_i32 = arith.constant 0 : i32
    %c0_i32_0 = arith.constant 0 : i32
    return %arg0, %c0_i32 : i32, i32
  }
}

</mosaic_0001>

<bundles_post_ra>
// kernel: embedding_block_forward.1
= control target key start
LH: loop header
LB: loop body
LE: loop exit
PB: predicated region body
PF: predicated region fallthrough
CT: control target
= control target key end

     0   :  { %13 = vsyncpa [#allocation3], 0  ;;  %s5495_s0 = inlined_call_operand.vmem [shape: s32[300,1], index: 0, kind: input, shape index: {}]   ;;  %s5496_s1 = inlined_call_operand.vmem [shape: s32[300,1], index: 1, kind: input, shape index: {}]   ;;  %s5497_s2 = inlined_call_operand.vmem [shape: bf16[300,8], index: 2, kind: input, shape index: {}]   ;;  %s5498_s3 = inlined_call_operand.vmem [shape: bf16[8,128], index: 3, kind: input, shape index: {}]   ;;  %s5499_s4 = inlined_call_operand.vmem [shape: f32[1,128], index: 4, kind: input, shape index: {}]   ;;  %s5500_s5 = inlined_call_operand.vmem [shape: bf16[256,128], index: 5, kind: input, shape index: {}]   ;;  %s5501_s6 = inlined_call_operand.vmem [shape: bf16[128,128], index: 6, kind: input, shape index: {}]   ;;  %s5502_s7 = inlined_call_operand.vmem [shape: f32[1,128], index: 7, kind: input, shape index: {}]   ;;  %s5503_s8 = inlined_call_operand.hbm [shape: bf16[300,128], index: 8, kind: output, shape index: {}]  }
   0x1   :  { %15 = vsyncpa [#allocation3 + $0x1], 0  ;;  %s4035_s27 = smov 0   ;;  %s4037_s28 = smov 0  }
   0x2   :  { %s4039_s29 = smov 0   ;;  %s4041_s30 = smov 0  }
   0x3 LB: > { %s4056_s9 = sadd.s32 4294967295, %s3981_s30   ;;  %s2903_s10 = sadd.s32 4294967294, %s3981_s30   ;;  %s3981_s30 = sphi %s4041_s30, %s5591_s30   ;;  %s3977_s29 = sphi %s4039_s29, %s5590_s29   ;;  %s3973_s28 = sphi %s4037_s28, %s5589_s28   ;;  %s3969_s27 = sphi %s4035_s27, %s5588_s27  }
   0x4   : > { %s4060_s11 = sadd.s32 1, %s3981_s30   ;;  %s211_s12 = sadd.s32 1, %s3977_s29 }
   0x5   : > { %s208_s13 = ssub.s32 %s3981_s30, %s4060_s11  ;;  %p221_p0 = scmp.ne.s32.totalorder %s3977_s29, %s3973_s28 }
   0x6   : > { %p209_p1 = scmp.eq.s32.totalorder %s208_s13, 0  ;;  %p222_p2 = scmp.eq.s32.totalorder %s4056_s9, 1 }
   0x7   : > { %p227_p3 = scmp.ne.s32.totalorder %s3973_s28, %s3969_s27  ;;  %p228_p4 = scmp.eq.s32.totalorder %s2903_s10, 1 }
   0x8   : > { %s4071_s14 = scalar_select %p209_p1, %s3977_s29, %s211_s12  }
   0x9   : > { %p4073_p5 = por %p222_p2, %p221_p0  ;;  %p4077_p6 = por %p228_p4, %p227_p3 }
   0xa   : > { %p2906_p7 = scmp.ge.s32.totalorder %s3981_s30, 1  ;;  %p312_p8 = scmp.lt.s32.totalorder %s3981_s30, 3 }
   0xc   : > { %p313_p9 = pnand %p2906_p7, %p312_p8 }
   0xd   : > { %v453_v0 = vld [vmem:[%s5498_s3] sm:$0xf] (!%p313_p9)  ;;  %vm612_vm0 = vcmask (!%p313_p9), 1043456   ;;  %s4087_s19 = smul.u32 (!%p313_p9), 37, %s4056_s9  ;;  %v3983_v1 = vmov (!%p313_p9), 0.0   ;;  %v3984_v2 = vmov (!%p313_p9), 0  }
   0xe   : > { %316 = sbr.rel (%p313_p9) target bundleno = 696 (0x2b8), region = 52  ;;  %3360 = vmatprep.subr.bf16.mxu0 (!%p313_p9), %v3983_v1  ;;  %3577 = vset.pattern.permute.xlu0 (!%p313_p9), %v3984_v2  ;;  %v614_v3 = vsel (!%p313_p9), %vm612_vm0, %v453_v0, 0  ;;  %vm3985_vm1 = vmmov (!%p313_p9), 0   ;;  %vm554_vm2 = vcmask (!%p313_p9), 64512   ;;  %v3592_v7 = vld [vmem:[%s5500_s5] sm:$0xff] (!%p313_p9)   ;;  %v3594_v12 = vld [vmem:[%s5500_s5 + $0x8] sm:$0xff] (!%p313_p9)  }
   0xf   : > { %3361 = vmatpush3.bf16.msra.mxu0 (!%p313_p9), %v614_v3  ;;  %p373_p10 = scmp.lt.s32.totalorder (!%p313_p9), %s4087_s19, 37  ;;  %3578 = vset.pattern.permute.xlu1 (!%p313_p9), %v3984_v2  ;;  %v3595_v19 = vld [vmem:[%s5500_s5 + $0x10] sm:$0xff] (!%p313_p9)   ;;  %v3597_v21 = vld [vmem:[%s5500_s5 + $0x18] sm:$0xff] (!%p313_p9)   ;;  %v3598_v29 = vld [vmem:[%s5500_s5 + $0x20] sm:$0xff] (!%p313_p9)  }
  0x10   : > { %3362 = vmatprep.mubr.msk.bf16.mxu0 (!%p313_p9), %vm3985_vm1, %v3983_v1  ;;  %3530 = vmatprep.subr.bf16.mxu1 (!%p313_p9), %v3983_v1  ;;  %v3600_v32 = vld [vmem:[%s5500_s5 + $0x28] sm:$0xff] (!%p313_p9)   ;;  %v3601_v47 = vld [vmem:[%s5500_s5 + $0x30] sm:$0xff] (!%p313_p9)   ;;  %v3603_v51 = vld [vmem:[%s5500_s5 + $0x38] sm:$0xff] (!%p313_p9)  }
  0x11   : > { %3531 = vmatpush3.bf16.msra.mxu1 (!%p313_p9), %v614_v3  ;;  %3402 = vmatprep.mubr.msk.bf16.mxu1 (!%p313_p9), %vm3985_vm1, %v3983_v1  ;;  %v3604_v57 = vld [vmem:[%s5500_s5 + $0x40] sm:$0xff] (!%p313_p9)  }
  0x12   : > { %2124 = vmatprep.subr.bf16.mxu0 (!%p313_p9), %v3984_v2  ;;  %3438 = vmatprep.subr.bf16.mxu1 (!%p313_p9), %v3983_v1 }
  0x15   : > { %s374_s20 = scalar_select %p373_p10, %s4087_s19, 37 }
  0x17   : > { %s2907_s21 = sshll.u32 %s374_s20, 3  ;;  %s2909_s22 = sshll.u32 %s374_s20, 2 }
  0x18   : > { %s4104_s25 = scalar_lea.vmem %s5495_s0, %s2907_s21  ;;  %s4109_s12 = scalar_lea.vmem %s5497_s2, %s2909_s22 }
  0x19   : > { %v1062_v4 = vld [vmem:[%s4104_s25] sm:$0xff]  ;;  %s4115_s18 = scalar_lea.vmem %s5496_s1, %s2907_s21  ;;  %v1063_v9 = vld [vmem:[%s4104_s25 + $0x8] sm:$0xff]  ;;  %v1064_v13 = vld [vmem:[%s4104_s25 + $0x10] sm:$0xff]  ;;  %s2806_s20 = ssub.s32 (%p4073_p5), 38, %s4087_s19 }
  0x1a   : > { %1100 = vperm.xlu0 %3577, %v1062_v4   ;;  %v3579_v5 = vld [vmem:[%s4109_s12] sm:$0xff]   ;;  %v1285_v10 = vld [vmem:[%s4115_s18 + $0x8] sm:$0xff]  ;;  %v1286_v14 = vld [vmem:[%s4115_s18 + $0x10] sm:$0xff]  ;;  %p2807_p11 = scmp.lt.s32.totalorder (%p4073_p5), %s2806_s20, 37 }
  0x1b   : > { %v1284_v6 = vld [vmem:[%s4115_s18] sm:$0xff]  ;;  %3363 = vmatmul.mubr.msk.bf16.vlgmr.msra.gmra.mrb[0].mxu0 %vm554_vm2, %v3579_v5  ;;  %v1322_v11 = vadd.s32 128, %v1285_v10  ;;  %v3580_v15 = vld [vmem:[%s4109_s12 + $0x8] sm:$0xff]   ;;  %v1065_v16 = vld [vmem:[%s4104_s25 + $0x18] sm:$0xff]  ;;  %v1323_v17 = vadd.s32 128, %v1286_v14 }
  0x1c   : > { %v1321_v8 = vadd.s32 128, %v1284_v6  ;;  %3366 = vmatprep.mubr.msk.bf16.mxu0 %vm3985_vm1, %v3983_v1  ;;  %2125 = vmatpush1.bf16.msra.mxu0 %v3592_v7  ;;  %v1287_v18 = vld [vmem:[%s4115_s18 + $0x18] sm:$0xff]  ;;  %v1066_v22 = vld [vmem:[%s4104_s25 + $0x20] sm:$0xff]  ;;  %v3581_v24 = vld [vmem:[%s4109_s12 + $0x10] sm:$0xff]  }
  0x1d   : > { %2126 = vmatprep.subr.bf16.mxu0 %v3984_v2  ;;  %v1324_v20 = vadd.s32 128, %v1287_v18  ;;  %v1288_v23 = vld [vmem:[%s4115_s18 + $0x20] sm:$0xff]  ;;  %v1067_v25 = vld [vmem:[%s4104_s25 + $0x28] sm:$0xff]  ;;  %v3586_v28 = vld [vmem:[%s4109_s12 + $0x50] sm:$0xff]  }
  0x1e   : > { %1359 = vperm.xlu1 %3578, %v1321_v8   ;;  %1103 = vperm.xlu0 %3577, %v1063_v9   ;;  %v1289_v26 = vld [vmem:[%s4115_s18 + $0x28] sm:$0xff]  ;;  %v1325_v27 = vadd.s32 128, %v1288_v23  ;;  %v1068_v31 = vld [vmem:[%s4104_s25 + $0x30] sm:$0xff]  ;;  %v3582_v34 = vld [vmem:[%s4109_s12 + $0x18] sm:$0xff]  }
  0x1f   : > { %3403 = vmatmul.mubr.msk.bf16.vlgmr.msra.gmra.mrb[0].mxu1 %vm554_vm2, %v3586_v28  ;;  %v1326_v30 = vadd.s32 128, %v1289_v26  ;;  %v1290_v33 = vld [vmem:[%s4115_s18 + $0x30] sm:$0xff]  ;;  %v3588_v35 = vld [vmem:[%s4109_s12 + $0x58] sm:$0xff]   ;;  %v1070_v40 = vld [vmem:[%s4104_s25 + $0x40] sm:$0xff] }
  0x20   : > { %2127 = vmatpush1.bf16.msra.mxu0 %v3594_v12  ;;  %3406 = vmatprep.mubr.msk.bf16.mxu1 %vm3985_vm1, %v3983_v1  ;;  %v1069_v36 = vld [vmem:[%s4104_s25 + $0x38] sm:$0xff]  ;;  %v1327_v37 = vadd.s32 128, %v1290_v33  ;;  %v1292_v41 = vld [vmem:[%s4115_s18 + $0x40] sm:$0xff]  ;;  %v1071_v44 = vld [vmem:[%s4104_s25 + $0x48] sm:$0xff] }
  0x21   : > { %2128 = vmatprep.subr.bf16.mxu0 %v3984_v2  ;;  %v1291_v38 = vld [vmem:[%s4115_s18 + $0x38] sm:$0xff]  ;;  %v3583_v42 = vld [vmem:[%s4109_s12 + $0x20] sm:$0xff]   ;;  %v1329_v45 = vadd.s32 128, %v1292_v41  ;;  %v1293_v46 = vld [vmem:[%s4115_s18 + $0x48] sm:$0xff] }
  0x22   : > { %1362 = vperm.xlu1 %3578, %v1322_v11   ;;  %1106 = vperm.xlu0 %3577, %v1064_v13   ;;  %v1328_v39 = vadd.s32 128, %v1291_v38  ;;  %v3590_v43 = vld [vmem:[%s4109_s12 + $0x60] sm:$0xff]   ;;  %v1330_v48 = vadd.s32 128, %v1293_v46  ;;  %v1072_v49 = vld [vmem:[%s4104_s25 + $0x50] sm:$0xff]  ;;  %v3584_v52 = vld [vmem:[%s4109_s12 + $0x28] sm:$0xff]  }
  0x23   : > { %3367 = vmatmul.mubr.msk.bf16.gmra.mrb[4].mxu0 %vm554_vm2, %v3580_v15  ;;  %v1294_v50 = vld [vmem:[%s4115_s18 + $0x50] sm:$0xff]  ;;  %v3593_v53 = vld [vmem:[%s4109_s12 + $0x68] sm:$0xff]   ;;  %v1073_v54 = vld [vmem:[%s4104_s25 + $0x58] sm:$0xff] }
  0x24   : > { %3370 = vmatprep.mubr.msk.bf16.mxu0 %vm3985_vm1, %v3983_v1  ;;  %2129 = vmatpush1.bf16.msra.mxu0 %v3595_v19  ;;  %v1331_v55 = vadd.s32 128, %v1294_v50  ;;  %v1295_v56 = vld [vmem:[%s4115_s18 + $0x58] sm:$0xff]  ;;  %v1074_v59 = vld [vmem:[%s4104_s25 + $0x60] sm:$0xff]  ;;  %v3585_v60 = vld [vmem:[%s4109_s12 + $0x30] sm:$0xff]  }
  0x25   : > { %2130 = vmatprep.subr.bf16.mxu0 %v3984_v2  ;;  %v1332_v58 = vadd.s32 128, %v1295_v56  ;;  %v1296_v61 = vld [vmem:[%s4115_s18 + $0x60] sm:$0xff]  ;;  %v3596_v62 = vld [vmem:[%s4109_s12 + $0x70] sm:$0xff]   ;;  %v1075_v63 = vld [vmem:[%s4104_s25 + $0x68] sm:$0xff] }
  0x26   : > { %1109 = vperm.xlu1 %3578, %v1065_v16   ;;  %1365 = vperm.xlu0 %3577, %v1323_v17   ;;  %v1333_v0 = vadd.s32 128, %v1296_v61  ;;  %v1297_v3 = vld [vmem:[%s4115_s18 + $0x68] sm:$0xff]  ;;  %v1298_v5 = vld [vmem:[%s4115_s18 + $0x70] sm:$0xff]  ;;  %v3587_v8 = vld [vmem:[%s4109_s12 + $0x38] sm:$0xff]  }
  0x27   : > { %3407 = vmatmul.mubr.msk.bf16.gmra.mrb[4].mxu1 %vm554_vm2, %v3588_v35  ;;  %v3606_v4 = vld [vmem:[%s5500_s5 + $0x48] sm:$0xff]   ;;  %v1334_v6 = vadd.s32 128, %v1297_v3  ;;  %v1076_v7 = vld [vmem:[%s4104_s25 + $0x70] sm:$0xff]  ;;  %v3599_v9 = vld [vmem:[%s4109_s12 + $0x78] sm:$0xff]   ;;  %v1335_v11 = vadd.s32 128, %v1298_v5 }
  0x28   : > { %2131 = vmatpush1.bf16.msra.mxu0 %v3597_v21  ;;  %3410 = vmatprep.mubr.msk.bf16.mxu1 %vm3985_vm1, %v3983_v1  ;;  %v3607_v10 = vld [vmem:[%s5500_s5 + $0x50] sm:$0xff]   ;;  %v3614_v12 = vld [vmem:[%s5501_s6] sm:$0xff]   ;;  %v1077_v13 = vld [vmem:[%s4104_s25 + $0x78] sm:$0xff] }
  0x29   : > { %2132 = vmatprep.subr.bf16.mxu0 %v3984_v2  ;;  %v1299_v14 = vld [vmem:[%s4115_s18 + $0x78] sm:$0xff]  ;;  %3439 = vmatpush3.bf16.msra.mxu1 %v3614_v12  ;;  %v3615_v15 = vld [vmem:[%s5501_s6 + $0x8] sm:$0xff]   ;;  %v1078_v18 = vld [vmem:[%s4104_s25 + $0x80] sm:$0xff] }
  0x2a   : > { %1368 = vperm.xlu1 %3578, %v1324_v20   ;;  %1112 = vperm.xlu0 %3577, %v1066_v22   ;;  %v3608_v16 = vld [vmem:[%s5500_s5 + $0x58] sm:$0xff]   ;;  %v1336_v17 = vadd.s32 128, %v1299_v14  ;;  %v1300_v19 = vld [vmem:[%s4115_s18 + $0x80] sm:$0xff]  ;;  %v1079_v22 = vld [vmem:[%s4104_s25 + $0x88] sm:$0xff] }
  0x2b   : > { %3371 = vmatmul.mubr.msk.bf16.gmra.mrb[8].mxu0 %vm554_vm2, %v3581_v24  ;;  %3440 = vmatprep.subr.bf16.mxu1 %v3983_v1  ;;  %v3589_v20 = vld [vmem:[%s4109_s12 + $0x40] sm:$0xff]   ;;  %v1337_v23 = vadd.s32 128, %v1300_v19  ;;  %v1301_v24 = vld [vmem:[%s4115_s18 + $0x88] sm:$0xff]  ;;  %v1080_v28 = vld [vmem:[%s4104_s25 + $0x90] sm:$0xff] }
  0x2c   : > { %3374 = vmatprep.mubr.msk.bf16.mxu0 %vm3985_vm1, %v3983_v1  ;;  %2133 = vmatpush1.bf16.msra.mxu0 %v3598_v29  ;;  %v3602_v21 = vld [vmem:[%s4109_s12 + $0x80] sm:$0xff]   ;;  %v1338_v26 = vadd.s32 128, %v1301_v24  ;;  %v1302_v29 = vld [vmem:[%s4115_s18 + $0x90] sm:$0xff]  ;;  %v1081_v33 = vld [vmem:[%s4104_s25 + $0x98] sm:$0xff] }
  0x2d   : > { %2134 = vmatprep.subr.bf16.mxu0 %v3984_v2  ;;  %3441 = vmatpush3.bf16.msra.mxu1 %v3615_v15  ;;  %v1303_v35 = vld [vmem:[%s4115_s18 + $0x98] sm:$0xff]  ;;  %v1082_v38 = vld [vmem:[%s4104_s25 + $0xa0] sm:$0xff]  ;;  %v3619_v5 = vld [vmem:[%s5501_s6 + $0x28] sm:$0xff]  }
  0x2e   : > { %1115 = vperm.xlu1 %3578, %v1067_v25   ;;  %1371 = vperm.xlu0 %3577, %v1325_v27   ;;  %v3610_v25 = vld [vmem:[%s5500_s5 + $0x60] sm:$0xff]   ;;  %v3616_v27 = vld [vmem:[%s5501_s6 + $0x10] sm:$0xff]   ;;  %v3617_v41 = vld [vmem:[%s5501_s6 + $0x18] sm:$0xff]  }
  0x2f   : > { %3411 = vmatmul.mubr.msk.bf16.gmra.mrb[8].mxu1 %vm554_vm2, %v3590_v43  ;;  %3442 = vmatprep.subr.bf16.mxu1 %v3983_v1  ;;  %v1083_v43 = vld [vmem:[%s4104_s25 + $0xa8] sm:$0xff]  ;;  %v1089_v61 = vld [vmem:[%s4104_s25 + $0xd8] sm:$0xff]  ;;  %v1090_v3 = vld [vmem:[%s4104_s25 + $0xe0] sm:$0xff] }
  0x30   : > { %2135 = vmatpush1.bf16.msra.mxu0 %v3600_v32  ;;  %3414 = vmatprep.mubr.msk.bf16.mxu1 %vm3985_vm1, %v3983_v1  ;;  %v3605_v32 = vld [vmem:[%s4109_s12 + $0x88] sm:$0xff]   ;;  %v1314_v12 = vld [vmem:[%s4115_s18 + $0xf0] sm:$0xff]  ;;  %v1093_v14 = vld [vmem:[%s4104_s25 + $0xf8] sm:$0xff] }
  0x31   : > { %2136 = vmatprep.subr.bf16.mxu0 %v3984_v2  ;;  %3443 = vmatpush3.bf16.msra.mxu1 %v3616_v27  ;;  %v1351_v15 = vadd.s32 128, %v1314_v12  ;;  %v1095_v24 = vld [vmem:[%s4104_s25 + $0x108] sm:$0xff] }
  0x32   : > { %1374 = vperm.xlu1 %3578, %v1326_v30   ;;  %1118 = vperm.xlu0 %3577, %v1068_v31   ;;  %v3611_v30 = vld [vmem:[%s5500_s5 + $0x68] sm:$0xff]  }
  0x33   : > { %3375 = vmatmul.mubr.msk.bf16.gmra.mrb[12].mxu0 %vm554_vm2, %v3582_v34  ;;  %v3591_v31 = vld [vmem:[%s4109_s12 + $0x48] sm:$0xff]   ;;  %3444 = vmatprep.subr.bf16.mxu1 %v3983_v1  ;;  %v1339_v34 = vadd.s32 128, %v1302_v29 }
  0x34   : > { %3378 = vmatprep.mubr.msk.bf16.mxu0 %vm3985_vm1, %v3983_v1  ;;  %2137 = vmatpush1.bf16.msra.mxu0 %v3601_v47  ;;  %v1306_v47 = vld [vmem:[%s4115_s18 + $0xb0] sm:$0xff] }
  0x35   : > { %2138 = vmatprep.subr.bf16.mxu0 %v3984_v2  ;;  %3445 = vmatpush3.bf16.msra.mxu1 %v3617_v41  ;;  %v1343_v50 = vadd.s32 128, %v1306_v47 }
  0x36   : > { %1121 = vperm.xlu1 %3578, %v1069_v36   ;;  %1377 = vperm.xlu0 %3577, %v1327_v37   ;;  %v3612_v36 = vld [vmem:[%s5500_s5 + $0x70] sm:$0xff]   ;;  %v1340_v37 = vadd.s32 128, %v1303_v35 }
  0x37   : > { %3415 = vmatmul.mubr.msk.bf16.gmra.mrb[12].mxu1 %vm554_vm2, %v3593_v53  ;;  %3446 = vmatprep.subr.bf16.mxu1 %v3983_v1  ;;  %v1086_v53 = vld [vmem:[%s4104_s25 + $0xc0] sm:$0xff] }
  0x38   : > { %2139 = vmatpush1.bf16.msra.mxu0 %v3603_v51  ;;  %3418 = vmatprep.mubr.msk.bf16.mxu1 %vm3985_vm1, %v3983_v1  ;;  %v1307_v51 = vld [vmem:[%s4115_s18 + $0xb8] sm:$0xff] }
  0x39   : > { %2140 = vmatprep.subr.bf16.mxu0 %v3984_v2 }
  0x3a   : > { %1380 = vperm.xlu1 %3578, %v1328_v39   ;;  %1124 = vperm.xlu0 %3577, %v1070_v40   ;;  %v1304_v39 = vld [vmem:[%s4115_s18 + $0xa0] sm:$0xff]  ;;  %v3613_v40 = vld [vmem:[%s5500_s5 + $0x78] sm:$0xff]  }
  0x3b   : > { %3379 = vmatmul.mubr.msk.bf16.gmra.mrb[16].mxu0 %vm554_vm2, %v3583_v42  ;;  %v3609_v42 = vld [vmem:[%s4109_s12 + $0x90] ss:$0 sps:$4 sm:$0xff]   ;;  %s365_s12 = sand.u32 1, %s3973_s28  }
  0x3c   : > { %3382 = vmatprep.mubr.msk.bf16.mxu0 %vm3985_vm1, %v3983_v1  ;;  %2141 = vmatpush1.bf16.msra.mxu0 %v3604_v57  ;;  %v1309_v57 = vld [vmem:[%s4115_s18 + $0xc8] sm:$0xff]  ;;  %s3532_s10 = smul.u32 148, %s365_s12  ;;  %s5434_s17 = scalar_lea.sflag [#allocation3], %s365_s12 }
  0x3d   : > { %2142 = vmatprep.subr.bf16.mxu0 %v3984_v2 }
  0x3e   : > { %1127 = vperm.xlu1 %3578, %v1071_v44   ;;  %1383 = vperm.xlu0 %3577, %v1329_v45   ;;  %v1341_v44 = vadd.s32 128, %v1304_v39  ;;  %v1305_v45 = vld [vmem:[%s4115_s18 + $0xa8] sm:$0xff]  ;;  %v1319_v39 = vld [vmem:[%s4115_s18 + $0x118] sm:$0xff]  ;;  %s5246_s13 = scalar_lea.vmem [#allocation2], %s3532_s10 }
  0x3f   : > { %3419 = vmatmul.mubr.msk.bf16.gmra.mrb[16].mxu1 %vm554_vm2, %v3596_v62  ;;  %v1342_v46 = vadd.s32 128, %v1305_v45  ;;  %v1098_v45 = vld [vmem:[%s4104_s25 + $0x120] sm:$0xff] }
  0x40   : > { %3422 = vmatprep.mubr.msk.bf16.mxu1 %vm3985_vm1, %v3983_v1  ;;  %2143 = vmatpush1.bf16.msra.mxu0 %v3606_v4  ;;  %v1312_v4 = vld [vmem:[%s4115_s18 + $0xe0] sm:$0xff] }
  0x41   : > { %2144 = vmatprep.subr.bf16.mxu0 %v3984_v2 }
  0x42   : > { %1386 = vperm.xlu1 %3578, %v1330_v48   ;;  %1130 = vperm.xlu0 %3577, %v1072_v49   ;;  %v3618_v48 = vld [vmem:[%s5501_s6 + $0x20] sm:$0xff]   ;;  %v1085_v49 = vld [vmem:[%s4104_s25 + $0xb8] sm:$0xff] }
  0x43   : > { %3383 = vmatmul.mubr.msk.bf16.gmra.mrb[20].mxu0 %vm554_vm2, %v3584_v52  ;;  %3447 = vmatpush3.bf16.msra.mxu1 %v3618_v48  ;;  %v1344_v52 = vadd.s32 128, %v1307_v51 }
  0x44   : > { %3386 = vmatprep.mubr.msk.bf16.mxu0 %vm3985_vm1, %v3983_v1  ;;  %2145 = vmatpush1.bf16.msra.mxu0 %v3607_v10 }
  0x45   : > { %2146 = vmatprep.subr.bf16.mxu0 %v3984_v2  ;;  %3448 = vmatprep.subr.bf16.mxu1 %v3983_v1 }
  0x46   : > { %1133 = vperm.xlu1 %3578, %v1073_v54   ;;  %1389 = vperm.xlu0 %3577, %v1331_v55   ;;  %v1308_v54 = vld [vmem:[%s4115_s18 + $0xc0] sm:$0xff]  ;;  %v1087_v55 = vld [vmem:[%s4104_s25 + $0xc8] sm:$0xff] }
  0x47   : > { %3423 = vmatmul.mubr.msk.bf16.gmra.mrb[20].mxu1 %vm554_vm2, %v3599_v9  ;;  %v1345_v56 = vadd.s32 128, %v1308_v54  ;;  %v3620_v9 = vld [vmem:[%s5501_s6 + $0x30] sm:$0xff]  }
  0x48   : > { %3426 = vmatprep.mubr.msk.bf16.mxu1 %vm3985_vm1, %v3983_v1  ;;  %2147 = vmatpush1.bf16.msra.mxu0 %v3608_v16  ;;  %v1315_v16 = vld [vmem:[%s4115_s18 + $0xf8] sm:$0xff] }
  0x49   : > { %2148 = vmatprep.subr.bf16.mxu0 %v3984_v2  ;;  %3449 = vmatpush3.bf16.msra.mxu1 %v3619_v5 }
  0x4a   : > { %1392 = vperm.xlu1 %3578, %v1332_v58   ;;  %1136 = vperm.xlu0 %3577, %v1074_v59   ;;  %v1346_v58 = vadd.s32 128, %v1309_v57  ;;  %v1088_v59 = vld [vmem:[%s4104_s25 + $0xd0] sm:$0xff] }
  0x4b   : > { %3387 = vmatmul.mubr.msk.bf16.gmra.mrb[24].mxu0 %vm554_vm2, %v3585_v60  ;;  %v1310_v60 = vld [vmem:[%s4115_s18 + $0xd0] sm:$0xff]  ;;  %3450 = vmatprep.subr.bf16.mxu1 %v3983_v1 }
  0x4c   : > { %3390 = vmatprep.mubr.msk.bf16.mxu0 %vm3985_vm1, %v3983_v1  ;;  %2149 = vmatpush1.bf16.msra.mxu0 %v3610_v25  ;;  %v1347_v62 = vadd.s32 128, %v1310_v60 }
  0x4d   : > { %2150 = vmatprep.subr.bf16.mxu0 %v3984_v2  ;;  %3451 = vmatpush3.bf16.msra.mxu1 %v3620_v9 }
  0x4e   : > { %1139 = vperm.xlu1 %3578, %v1075_v63   ;;  %1395 = vperm.xlu0 %3577, %v1333_v0   ;;  %v1311_v63 = vld [vmem:[%s4115_s18 + $0xd8] sm:$0xff] }
  0x4f   : > { %3427 = vmatmul.mubr.msk.bf16.gmra.mrb[24].mxu1 %vm554_vm2, %v3602_v21  ;;  %v1348_v0 = vadd.s32 128, %v1311_v63  ;;  %3452 = vmatprep.subr.bf16.mxu1 %v3983_v1  ;;  %v1316_v21 = vld [vmem:[%s4115_s18 + $0x100] sm:$0xff] }
  0x50   : > { %3430 = vmatprep.mubr.msk.bf16.mxu1 %vm3985_vm1, %v3983_v1  ;;  %2151 = vmatpush1.bf16.msra.mxu0 %v3611_v30  ;;  %v1353_v25 = vadd.s32 128, %v1316_v21  ;;  %v1096_v30 = vld [vmem:[%s4104_s25 + $0x110] sm:$0xff] }
  0x51   : > { %2152 = vmatprep.subr.bf16.mxu0 %v3984_v2 }
  0x52   : > { %1398 = vperm.xlu1 %3578, %v1334_v6   ;;  %1142 = vperm.xlu0 %3577, %v1076_v7   ;;  %v1091_v6 = vld [vmem:[%s4104_s25 + $0xe8] sm:$0xff]  ;;  %v1349_v7 = vadd.s32 128, %v1312_v4 }
  0x53   : > { %3391 = vmatmul.mubr.msk.bf16.gmra.mrb[28].mxu0 %vm554_vm2, %v3587_v8  ;;  %v1313_v8 = vld [vmem:[%s4115_s18 + $0xe8] sm:$0xff] }
  0x54   : > { %3394 = vmatprep.mubr.msk.bf16.mxu0 %vm3985_vm1, %v3983_v1  ;;  %2153 = vmatpush1.bf16.msra.mxu0 %v3612_v36  ;;  %v1350_v10 = vadd.s32 128, %v1313_v8 }
  0x55   : > { %2154 = vmatprep.subr.bf16.mxu0 %v3984_v2  ;;  %v1084_v2 = vld [vmem:[%s4104_s25 + $0xb0] sm:$0xff] }
  0x56   : > { %1145 = vperm.xlu1 %3578, %v1077_v13   ;;  %1401 = vperm.xlu0 %3577, %v1335_v11   ;;  %v1092_v11 = vld [vmem:[%s4104_s25 + $0xf0] sm:$0xff]  ;;  %v3621_v13 = vld [vmem:[%s5501_s6 + $0x38] sm:$0xff]  }
  0x57   : > { %3431 = vmatmul.mubr.msk.bf16.gmra.mrb[28].mxu1 %vm554_vm2, %v3605_v32 }
  0x58   : > { %3434 = vmatprep.mubr.msk.bf16.mxu1 %vm3985_vm1, %v3983_v1  ;;  %2155 = vmatpush1.bf16.msra.mxu0 %v3613_v40 }
  0x59   : > { %3453 = vmatpush3.bf16.msra.mxu1 %v3621_v13 }
  0x5a   : > { %1404 = vperm.xlu1 %3578, %v1336_v17   ;;  %1148 = vperm.xlu0 %3577, %v1078_v18   ;;  %v1059_v17 = vlaneseq  ;;  %v1352_v18 = vadd.s32 128, %v1315_v16 }
  0x5b   : > { %3395 = vmatmul.mubr.msk.bf16.gmra.mrb[32].mxu0 %vm554_vm2, %v3589_v20  ;;  %v1094_v20 = vld [vmem:[%s4104_s25 + $0x100] sm:$0xff] }
  0x5c   : > { %3398 = vmatprep.mubr.msk.bf16.mxu0 %vm3985_vm1, %v3983_v1  ;;  %v4348_v19 = vand.u32 127, %v1059_v17 }
  0x5e   : > { %1151 = vperm.xlu1 %3578, %v1079_v22   ;;  %1407 = vperm.xlu0 %3577, %v1337_v23   ;;  %v4353_v23 = vadd.s32 128, %v4348_v19 }
  0x5f   : > { %3435 = vmatmul.mubr.msk.bf16.gmra.mrb[32].mxu1 %vm554_vm2, %v3609_v42  ;;  %v1356_v42 = vadd.s32 128, %v1319_v39 }
  0x60   : > { %3454 = vmatprep.mubr.msk.bf16.mxu1 %vm3985_vm1, %v3983_v1 }
  0x62   : > { %1410 = vperm.xlu1 %3578, %v1338_v26   ;;  %1154 = vperm.xlu0 %3577, %v1080_v28   ;;  %v1317_v26 = vld [vmem:[%s4115_s18 + $0x108] sm:$0xff] }
  0x63   : > { %3399 = vmatmul.mubr.msk.bf16.gmra.mrb[36].mxu0 %vm554_vm2, %v3591_v31  ;;  %v1354_v29 = vadd.s32 128, %v1317_v26  ;;  %v1318_v31 = vld [vmem:[%s4115_s18 + $0x110] sm:$0xff] }
  0x66   : > { %1157 = vperm.xlu1 %3578, %v1081_v33   ;;  %1413 = vperm.xlu0 %3577, %v1339_v34  }
  0x6a   : > { %1416 = vperm.xlu1 %3578, %v1340_v37   ;;  %1160 = vperm.xlu0 %3577, %v1082_v38   ;;  %v1097_v37 = vld [vmem:[%s4104_s25 + $0x118] sm:$0xff]  ;;  %v1355_v38 = vadd.s32 128, %v1318_v31  ;;  %v4540_v31 = vld [vmem:[%s5499_s4] ss:$0 sm:$0xff] }
  0x6e   : > { %1163 = vperm.xlu1 %3578, %v1083_v43   ;;  %1419 = vperm.xlu0 %3577, %v1341_v44   ;;  %v3986_v43 = vmov 1.0|1.0   ;;  %v1320_v44 = vld [vmem:[%s4115_s18 + $0x120] sm:$0xff] }
  0x6f   : > { %v1357_v48 = vadd.s32 128, %v1320_v44 }
  0x72   : > { %1422 = vperm.xlu1 %3578, %v1342_v46   ;;  %1166 = vperm.xlu0 %3577, %v1084_v2  }
  0x76   : > { %1169 = vperm.xlu1 %3578, %v1085_v49   ;;  %1425 = vperm.xlu0 %3577, %v1343_v50  }
  0x7a   : > { %1428 = vperm.xlu1 %3578, %v1344_v52   ;;  %1172 = vperm.xlu0 %3577, %v1086_v53  }
  0x7e   : > { %1175 = vperm.xlu1 %3578, %v1087_v55   ;;  %1431 = vperm.xlu0 %3577, %v1345_v56  }
  0x82   : > { %1434 = vperm.xlu1 %3578, %v1346_v58   ;;  %1178 = vperm.xlu0 %3577, %v1088_v59  }
  0x86   : > { %1181 = vperm.xlu1 %3578, %v1089_v61   ;;  %1437 = vperm.xlu0 %3577, %v1347_v62  }
  0x8a   : > { %1440 = vperm.xlu1 %3578, %v1348_v0   ;;  %1184 = vperm.xlu0 %3577, %v1090_v3  }
  0x8e   : > { %1187 = vperm.xlu1 %3578, %v1091_v6   ;;  %1443 = vperm.xlu0 %3577, %v1349_v7  }
  0x92   : > { %1446 = vperm.xlu1 %3578, %v1350_v10   ;;  %1190 = vperm.xlu0 %3577, %v1092_v11  }
  0x96   : > { %1193 = vperm.xlu1 %3578, %v1093_v14   ;;  %1449 = vperm.xlu0 %3577, %v1351_v15  }
  0x99   : > { %v1101_v22 = vpop.permute.xlu0 %1100 }
  0x9a   : > { %1452 = vperm.xlu1 %3578, %v1352_v18   ;;  %1196 = vperm.xlu0 %3577, %v1094_v20   ;;  %vm1210_vm3 = vcmp.eq.s32.totalorder %v4348_v19, %v1101_v22  ;;  %vm1211_vm5 = vcmp.eq.s32.totalorder %v4353_v23, %v1101_v22 }
  0x9d   : > { %v1360_v27 = vpop.permute.xlu1 %1359  ;;  %v1104_v28 = vpop.permute.xlu0 %1103 }
  0x9e   : > { %vm1469_vm4 = vcmp.eq.s32.totalorder %v4348_v19, %v1360_v27  ;;  %1199 = vperm.xlu1 %3578, %v1095_v24   ;;  %vm1470_vm6 = vcmp.eq.s32.totalorder %v4353_v23, %v1360_v27  ;;  %1455 = vperm.xlu0 %3577, %v1353_v25   ;;  %vm1212_vm7 = vcmp.eq.s32.totalorder %v4348_v19, %v1104_v28 }
  0x9f   : > { %vm4364_vm8 = vmor %vm1210_vm3, %vm1469_vm4  ;;  %vm1213_vm9 = vcmp.eq.s32.totalorder %v4353_v23, %v1104_v28 }
  0xa0   : > { %vm4369_vm10 = vmor %vm1211_vm5, %vm1470_vm6 }
  0xa1   : > { %v1363_v33 = vpop.permute.xlu1 %1362  ;;  %v1107_v35 = vpop.permute.xlu0 %1106 }
  0xa2   : > { %vm1471_vm11 = vcmp.eq.s32.totalorder %v4348_v19, %v1363_v33  ;;  %vm1472_vm12 = vcmp.eq.s32.totalorder %v4353_v23, %v1363_v33  ;;  %1458 = vperm.xlu1 %3578, %v1354_v29   ;;  %1202 = vperm.xlu0 %3577, %v1096_v30   ;;  %vm1214_vm0 = vcmp.eq.s32.totalorder %v4348_v19, %v1107_v35 }
  0xa3   : > { %vm4375_vm13 = vmor %vm1212_vm7, %vm1471_vm11  ;;  %vm1215_vm3 = vcmp.eq.s32.totalorder %v4353_v23, %v1107_v35 }
  0xa4   : > { %vm1546_vm14 = vmor %vm1213_vm9, %vm1472_vm12 }
  0xa5   : > { %vm3012_vm15 = vmpackc.low %vm4375_vm13, %vm4364_vm8  ;;  %v1110_v40 = vpop.permute.xlu1 %1109  ;;  %v1366_v41 = vpop.permute.xlu0 %1365 }
  0xa6   : > { %vm3010_vm2 = vmpackc.low %vm1546_vm14, %vm4369_vm10  ;;  %1205 = vperm.xlu1 %3578, %v1097_v37   ;;  %vm1473_vm4 = vcmp.eq.s32.totalorder %v4348_v19, %v1366_v41  ;;  %vm1474_vm5 = vcmp.eq.s32.totalorder %v4353_v23, %v1366_v41  ;;  %1461 = vperm.xlu0 %3577, %v1355_v38   ;;  %vm1216_vm6 = vcmp.eq.s32.totalorder %v4348_v19, %v1110_v40 }
  0xa7   : > { %3011 = vmatprep.mubr.msk.bf16.mxu0 %vm3010_vm2, %v3986_v43  ;;  %vm1217_vm7 = vcmp.eq.s32.totalorder %v4353_v23, %v1110_v40  ;;  %vm4399_vm8 = vmor %vm1214_vm0, %vm1473_vm4 }
  0xa8   : > { %3013 = vmatmul.mubr.msk.bf16.vlgmr.msra.gmra.mrb[40].mxu0 %vm3012_vm15, %v3986_v43  ;;  %vm1548_vm9 = vmor %vm1215_vm3, %vm1474_vm5 }
  0xa9   : > { %v1369_v2 = vpop.permute.xlu1 %1368  ;;  %v1113_v47 = vpop.permute.xlu0 %1112 }
  0xaa   : > { %vm1475_vm10 = vcmp.eq.s32.totalorder %v4348_v19, %v1369_v2  ;;  %vm1476_vm11 = vcmp.eq.s32.totalorder %v4353_v23, %v1369_v2  ;;  %1464 = vperm.xlu1 %3578, %v1356_v42   ;;  %1208 = vperm.xlu0 %3577, %v1098_v45   ;;  %vm1218_vm15 = vcmp.eq.s32.totalorder %v4348_v19, %v1113_v47 }
  0xab   : > { %vm1549_vm12 = vmor %vm1216_vm6, %vm1475_vm10  ;;  %vm1219_vm2 = vcmp.eq.s32.totalorder %v4353_v23, %v1113_v47 }
  0xac   : > { %vm1550_vm13 = vmor %vm1217_vm7, %vm1476_vm11 }
  0xad   : > { %v1116_v49 = vpop.permute.xlu1 %1115  ;;  %vm3014_vm14 = vmpackc.low %vm1550_vm13, %vm1548_vm9  ;;  %v1372_v50 = vpop.permute.xlu0 %1371 }
  0xae   : > { %3015 = vmatprep.mubr.msk.bf16.mxu0 %vm3014_vm14, %v3986_v43  ;;  %1467 = vperm.xlu1 %3578, %v1357_v48   ;;  %vm3016_vm0 = vmpackc.low %vm1549_vm12, %vm4399_vm8  ;;  %vm1477_vm3 = vcmp.eq.s32.totalorder %v4348_v19, %v1372_v50  ;;  %vm1478_vm4 = vcmp.eq.s32.totalorder %v4353_v23, %v1372_v50  ;;  %vm1220_vm5 = vcmp.eq.s32.totalorder %v4348_v19, %v1116_v49 }
  0xaf   : > { %vm1221_vm6 = vcmp.eq.s32.totalorder %v4353_v23, %v1116_v49  ;;  %vm4415_vm7 = vmor %vm1218_vm15, %vm1477_vm3 }
  0xb0   : > { %3017 = vmatmul.mubr.msk.bf16.gmra.mrb[44].mxu0 %vm3016_vm0, %v3986_v43  ;;  %vm1552_vm9 = vmor %vm1219_vm2, %vm1478_vm4 }
  0xb1   : > { %v1375_v52 = vpop.permute.xlu1 %1374  ;;  %v1119_v53 = vpop.permute.xlu0 %1118 }
  0xb2   : > { %vm1479_vm8 = vcmp.eq.s32.totalorder %v4348_v19, %v1375_v52  ;;  %vm1480_vm10 = vcmp.eq.s32.totalorder %v4353_v23, %v1375_v52  ;;  %vm1222_vm14 = vcmp.eq.s32.totalorder %v4348_v19, %v1119_v53  ;;  %vm1223_vm0 = vcmp.eq.s32.totalorder %v4353_v23, %v1119_v53 }
  0xb3   : > { %vm1553_vm11 = vmor %vm1220_vm5, %vm1479_vm8 }
  0xb4   : > { %vm1554_vm12 = vmor %vm1221_vm6, %vm1480_vm10 }
  0xb5   : > { %v1122_v54 = vpop.permute.xlu1 %1121  ;;  %vm3018_vm13 = vmpackc.low %vm1554_vm12, %vm1552_vm9  ;;  %v1378_v55 = vpop.permute.xlu0 %1377 }
  0xb6   : > { %3019 = vmatprep.mubr.msk.bf16.mxu0 %vm3018_vm13, %v3986_v43  ;;  %vm3020_vm15 = vmpackc.low %vm1553_vm11, %vm4415_vm7  ;;  %vm1481_vm2 = vcmp.eq.s32.totalorder %v4348_v19, %v1378_v55  ;;  %vm1482_vm3 = vcmp.eq.s32.totalorder %v4353_v23, %v1378_v55  ;;  %vm1224_vm4 = vcmp.eq.s32.totalorder %v4348_v19, %v1122_v54  ;;  %vm1225_vm5 = vcmp.eq.s32.totalorder %v4353_v23, %v1122_v54 }
  0xb7   : > { %vm4431_vm6 = vmor %vm1222_vm14, %vm1481_vm2 }
  0xb8   : > { %3021 = vmatmul.mubr.msk.bf16.gmra.mrb[48].mxu0 %vm3020_vm15, %v3986_v43  ;;  %vm1556_vm9 = vmor %vm1223_vm0, %vm1482_vm3 }
  0xb9   : > { %v1381_v57 = vpop.permute.xlu1 %1380  ;;  %v1125_v58 = vpop.permute.xlu0 %1124 }
  0xba   : > { %vm1483_vm7 = vcmp.eq.s32.totalorder %v4348_v19, %v1381_v57  ;;  %vm1484_vm8 = vcmp.eq.s32.totalorder %v4353_v23, %v1381_v57  ;;  %vm1226_vm13 = vcmp.eq.s32.totalorder %v4348_v19, %v1125_v58  ;;  %vm1227_vm15 = vcmp.eq.s32.totalorder %v4353_v23, %v1125_v58 }
  0xbb   : > { %vm1557_vm10 = vmor %vm1224_vm4, %vm1483_vm7 }
  0xbc   : > { %vm1558_vm11 = vmor %vm1225_vm5, %vm1484_vm8 }
  0xbd   : > { %v1128_v59 = vpop.permute.xlu1 %1127  ;;  %vm3022_vm12 = vmpackc.low %vm1558_vm11, %vm1556_vm9  ;;  %v1384_v60 = vpop.permute.xlu0 %1383 }
  0xbe   : > { %3023 = vmatprep.mubr.msk.bf16.mxu0 %vm3022_vm12, %v3986_v43  ;;  %vm3024_vm14 = vmpackc.low %vm1557_vm10, %vm4431_vm6  ;;  %vm1485_vm0 = vcmp.eq.s32.totalorder %v4348_v19, %v1384_v60  ;;  %vm1486_vm2 = vcmp.eq.s32.totalorder %v4353_v23, %v1384_v60  ;;  %vm1228_vm3 = vcmp.eq.s32.totalorder %v4348_v19, %v1128_v59  ;;  %vm1229_vm4 = vcmp.eq.s32.totalorder %v4353_v23, %v1128_v59 }
  0xbf   : > { %vm4447_vm5 = vmor %vm1226_vm13, %vm1485_vm0 }
  0xc0   : > { %3025 = vmatmul.mubr.msk.bf16.gmra.mrb[52].mxu0 %vm3024_vm14, %v3986_v43  ;;  %vm1560_vm9 = vmor %vm1227_vm15, %vm1486_vm2 }
  0xc1   : > { %v1387_v62 = vpop.permute.xlu1 %1386  ;;  %v1131_v63 = vpop.permute.xlu0 %1130 }
  0xc2   : > { %vm1487_vm6 = vcmp.eq.s32.totalorder %v4348_v19, %v1387_v62  ;;  %vm1488_vm7 = vcmp.eq.s32.totalorder %v4353_v23, %v1387_v62  ;;  %vm1230_vm12 = vcmp.eq.s32.totalorder %v4348_v19, %v1131_v63  ;;  %vm1231_vm14 = vcmp.eq.s32.totalorder %v4353_v23, %v1131_v63 }
  0xc3   : > { %vm1561_vm8 = vmor %vm1228_vm3, %vm1487_vm6 }
  0xc4   : > { %vm1562_vm10 = vmor %vm1229_vm4, %vm1488_vm7 }
  0xc5   : > { %v1134_v0 = vpop.permute.xlu1 %1133  ;;  %vm3026_vm11 = vmpackc.low %vm1562_vm10, %vm1560_vm9  ;;  %v1390_v3 = vpop.permute.xlu0 %1389 }
  0xc6   : > { %3027 = vmatprep.mubr.msk.bf16.mxu0 %vm3026_vm11, %v3986_v43  ;;  %vm3028_vm13 = vmpackc.low %vm1561_vm8, %vm4447_vm5  ;;  %vm1489_vm15 = vcmp.eq.s32.totalorder %v4348_v19, %v1390_v3  ;;  %vm1490_vm0 = vcmp.eq.s32.totalorder %v4353_v23, %v1390_v3  ;;  %vm1232_vm2 = vcmp.eq.s32.totalorder %v4348_v19, %v1134_v0  ;;  %vm1233_vm3 = vcmp.eq.s32.totalorder %v4353_v23, %v1134_v0 }
  0xc7   : > { %vm4463_vm4 = vmor %vm1230_vm12, %vm1489_vm15 }
  0xc8   : > { %3029 = vmatmul.mubr.msk.bf16.gmra.mrb[56].mxu0 %vm3028_vm13, %v3986_v43  ;;  %vm1564_vm9 = vmor %vm1231_vm14, %vm1490_vm0 }
  0xc9   : > { %v1393_v5 = vpop.permute.xlu1 %1392  ;;  %v1137_v6 = vpop.permute.xlu0 %1136 }
  0xca   : > { %vm1491_vm5 = vcmp.eq.s32.totalorder %v4348_v19, %v1393_v5  ;;  %vm1492_vm6 = vcmp.eq.s32.totalorder %v4353_v23, %v1393_v5  ;;  %vm1234_vm11 = vcmp.eq.s32.totalorder %v4348_v19, %v1137_v6  ;;  %vm1235_vm13 = vcmp.eq.s32.totalorder %v4353_v23, %v1137_v6 }
  0xcb   : > { %vm1565_vm7 = vmor %vm1232_vm2, %vm1491_vm5 }
  0xcc   : > { %vm1566_vm8 = vmor %vm1233_vm3, %vm1492_vm6 }
  0xcd   : > { %v1140_v7 = vpop.permute.xlu1 %1139  ;;  %vm3030_vm10 = vmpackc.low %vm1566_vm8, %vm1564_vm9  ;;  %v1396_v8 = vpop.permute.xlu0 %1395 }
  0xce   : > { %3031 = vmatprep.mubr.msk.bf16.mxu0 %vm3030_vm10, %v3986_v43  ;;  %vm3032_vm12 = vmpackc.low %vm1565_vm7, %vm4463_vm4  ;;  %vm1493_vm14 = vcmp.eq.s32.totalorder %v4348_v19, %v1396_v8  ;;  %vm1494_vm15 = vcmp.eq.s32.totalorder %v4353_v23, %v1396_v8  ;;  %vm1236_vm0 = vcmp.eq.s32.totalorder %v4348_v19, %v1140_v7  ;;  %vm1237_vm2 = vcmp.eq.s32.totalorder %v4353_v23, %v1140_v7 }
  0xcf   : > { %vm4479_vm3 = vmor %vm1234_vm11, %vm1493_vm14 }
  0xd0   : > { %3033 = vmatmul.mubr.msk.bf16.gmra.mrb[60].mxu0 %vm3032_vm12, %v3986_v43  ;;  %vm1568_vm9 = vmor %vm1235_vm13, %vm1494_vm15 }
  0xd1   : > { %v1399_v10 = vpop.permute.xlu1 %1398  ;;  %v1143_v11 = vpop.permute.xlu0 %1142 }
  0xd2   : > { %vm1495_vm4 = vcmp.eq.s32.totalorder %v4348_v19, %v1399_v10  ;;  %vm1496_vm5 = vcmp.eq.s32.totalorder %v4353_v23, %v1399_v10  ;;  %vm1238_vm10 = vcmp.eq.s32.totalorder %v4348_v19, %v1143_v11  ;;  %vm1239_vm12 = vcmp.eq.s32.totalorder %v4353_v23, %v1143_v11 }
  0xd3   : > { %vm1569_vm6 = vmor %vm1236_vm0, %vm1495_vm4 }
  0xd4   : > { %vm1570_vm7 = vmor %vm1237_vm2, %vm1496_vm5 }
  0xd5   : > { %v1146_v12 = vpop.permute.xlu1 %1145  ;;  %vm3034_vm8 = vmpackc.low %vm1570_vm7, %vm1568_vm9  ;;  %v1402_v13 = vpop.permute.xlu0 %1401 }
  0xd6   : > { %3035 = vmatprep.mubr.msk.bf16.mxu0 %vm3034_vm8, %v3986_v43  ;;  %vm3036_vm11 = vmpackc.low %vm1569_vm6, %vm4479_vm3  ;;  %vm1497_vm13 = vcmp.eq.s32.totalorder %v4348_v19, %v1402_v13  ;;  %vm1498_vm14 = vcmp.eq.s32.totalorder %v4353_v23, %v1402_v13  ;;  %vm1240_vm15 = vcmp.eq.s32.totalorder %v4348_v19, %v1146_v12  ;;  %vm1241_vm0 = vcmp.eq.s32.totalorder %v4353_v23, %v1146_v12 }
  0xd7   : > { %vm4495_vm2 = vmor %vm1238_vm10, %vm1497_vm13 }
  0xd8   : > { %3037 = vmatmul.mubr.msk.bf16.gmra.mrb[64].mxu0 %vm3036_vm11, %v3986_v43  ;;  %vm1572_vm9 = vmor %vm1239_vm12, %vm1498_vm14 }
  0xd9   : > { %v1405_v15 = vpop.permute.xlu1 %1404  ;;  %v1149_v16 = vpop.permute.xlu0 %1148 }
  0xda   : > { %vm1499_vm3 = vcmp.eq.s32.totalorder %v4348_v19, %v1405_v15  ;;  %vm1500_vm4 = vcmp.eq.s32.totalorder %v4353_v23, %v1405_v15  ;;  %vm1242_vm8 = vcmp.eq.s32.totalorder %v4348_v19, %v1149_v16  ;;  %vm1243_vm11 = vcmp.eq.s32.totalorder %v4353_v23, %v1149_v16 }
  0xdb   : > { %vm1573_vm5 = vmor %vm1240_vm15, %vm1499_vm3 }
  0xdc   : > { %vm1574_vm6 = vmor %vm1241_vm0, %vm1500_vm4 }
  0xdd   : > { %v1152_v17 = vpop.permute.xlu1 %1151  ;;  %vm3038_vm7 = vmpackc.low %vm1574_vm6, %vm1572_vm9  ;;  %v1408_v18 = vpop.permute.xlu0 %1407 }
  0xde   : > { %3039 = vmatprep.mubr.msk.bf16.mxu0 %vm3038_vm7, %v3986_v43  ;;  %vm3040_vm10 = vmpackc.low %vm1573_vm5, %vm4495_vm2  ;;  %vm1501_vm12 = vcmp.eq.s32.totalorder %v4348_v19, %v1408_v18  ;;  %vm1502_vm13 = vcmp.eq.s32.totalorder %v4353_v23, %v1408_v18  ;;  %vm1244_vm14 = vcmp.eq.s32.totalorder %v4348_v19, %v1152_v17  ;;  %vm1245_vm15 = vcmp.eq.s32.totalorder %v4353_v23, %v1152_v17 }
  0xdf   : > { %vm4511_vm0 = vmor %vm1242_vm8, %vm1501_vm12 }
  0xe0   : > { %3041 = vmatmul.mubr.msk.bf16.gmra.mrb[68].mxu0 %vm3040_vm10, %v3986_v43  ;;  %vm1576_vm9 = vmor %vm1243_vm11, %vm1502_vm13 }
  0xe1   : > { %v1411_v21 = vpop.permute.xlu1 %1410  ;;  %v1155_v22 = vpop.permute.xlu0 %1154 }
  0xe2   : > { %vm1503_vm2 = vcmp.eq.s32.totalorder %v4348_v19, %v1411_v21  ;;  %vm1504_vm3 = vcmp.eq.s32.totalorder %v4353_v23, %v1411_v21  ;;  %vm1246_vm7 = vcmp.eq.s32.totalorder %v4348_v19, %v1155_v22  ;;  %vm1247_vm10 = vcmp.eq.s32.totalorder %v4353_v23, %v1155_v22 }
  0xe3   : > { %vm1577_vm4 = vmor %vm1244_vm14, %vm1503_vm2 }
  0xe4   : > { %vm1578_vm5 = vmor %vm1245_vm15, %vm1504_vm3 }
  0xe5   : > { %v1158_v24 = vpop.permute.xlu1 %1157  ;;  %vm3042_vm6 = vmpackc.low %vm1578_vm5, %vm1576_vm9  ;;  %v1414_v25 = vpop.permute.xlu0 %1413 }
  0xe6   : > { %3043 = vmatprep.mubr.msk.bf16.mxu0 %vm3042_vm6, %v3986_v43  ;;  %vm3044_vm8 = vmpackc.low %vm1577_vm4, %vm4511_vm0  ;;  %vm1505_vm11 = vcmp.eq.s32.totalorder %v4348_v19, %v1414_v25  ;;  %vm1506_vm12 = vcmp.eq.s32.totalorder %v4353_v23, %v1414_v25  ;;  %vm1248_vm13 = vcmp.eq.s32.totalorder %v4348_v19, %v1158_v24  ;;  %vm1249_vm14 = vcmp.eq.s32.totalorder %v4353_v23, %v1158_v24 }
  0xe7   : > { %vm4527_vm15 = vmor %vm1246_vm7, %vm1505_vm11 }
  0xe8   : > { %3045 = vmatmul.mubr.msk.bf16.gmra.mrb[72].mxu0 %vm3044_vm8, %v3986_v43  ;;  %vm1580_vm9 = vmor %vm1247_vm10, %vm1506_vm12 }
  0xe9   : > { %v1417_v27 = vpop.permute.xlu1 %1416  ;;  %v1161_v28 = vpop.permute.xlu0 %1160 }
  0xea   : > { %vm1507_vm0 = vcmp.eq.s32.totalorder %v4348_v19, %v1417_v27  ;;  %vm1508_vm2 = vcmp.eq.s32.totalorder %v4353_v23, %v1417_v27  ;;  %vm1250_vm6 = vcmp.eq.s32.totalorder %v4348_v19, %v1161_v28  ;;  %vm1251_vm8 = vcmp.eq.s32.totalorder %v4353_v23, %v1161_v28 }
  0xeb   : > { %vm1581_vm3 = vmor %vm1248_vm13, %vm1507_vm0 }
  0xec   : > { %vm1582_vm4 = vmor %vm1249_vm14, %vm1508_vm2 }
  0xed   : > { %v1164_v29 = vpop.permute.xlu1 %1163  ;;  %vm3046_vm5 = vmpackc.low %vm1582_vm4, %vm1580_vm9  ;;  %v1420_v30 = vpop.permute.xlu0 %1419 }
  0xee   : > { %3047 = vmatprep.mubr.msk.bf16.mxu0 %vm3046_vm5, %v3986_v43  ;;  %vm3048_vm7 = vmpackc.low %vm1581_vm3, %vm4527_vm15  ;;  %vm1509_vm10 = vcmp.eq.s32.totalorder %v4348_v19, %v1420_v30  ;;  %vm1510_vm11 = vcmp.eq.s32.totalorder %v4353_v23, %v1420_v30  ;;  %vm1252_vm12 = vcmp.eq.s32.totalorder %v4348_v19, %v1164_v29  ;;  %v650_v32 = vpop.f32.mrb[0].mxu0  ;;  %vm1253_vm13 = vcmp.eq.s32.totalorder %v4353_v23, %v1164_v29 }
  0xef   : > { %vm4548_vm14 = vmor %vm1250_vm6, %vm1509_vm10  ;;  %v4553_v34 = vadd.f32 %v4540_v31, %v650_v32  ;;  %v3364_v36 = vpop.f32.mrb[1].mxu0 }
  0xf0   : > { %3049 = vmatmul.mubr.msk.bf16.gmra.mrb[76].mxu0 %vm3048_vm7, %v3986_v43  ;;  %vm4555_vm15 = vmor %vm1251_vm8, %vm1510_vm11  ;;  %v653_v38 = vpop.f32.mrb[2].mxu0 }
  0xf1   : > { %v1423_v35 = vpop.permute.xlu1 %1422  ;;  %v1167_v39 = vpop.permute.xlu0 %1166  ;;  %v2949_v40 = vmul.f32 -1.442695, %v4553_v34  ;;  %v4567_v42 = vadd.f32 %v4540_v31, %v653_v38 }
  0xf2   : > { %vm1511_vm9 = vcmp.eq.s32.totalorder %v4348_v19, %v1423_v35  ;;  %vm1512_vm0 = vcmp.eq.s32.totalorder %v4353_v23, %v1423_v35  ;;  %v3365_v44 = vpop.f32.mrb[3].mxu0  ;;  %vm1254_vm5 = vcmp.eq.s32.totalorder %v4348_v19, %v1167_v39  ;;  %vm1255_vm7 = vcmp.eq.s32.totalorder %v4353_v23, %v1167_v39  ;;  %v730_v3 = vpop.f32.mrb[0].mxu1 }
  0xf3   : > { %vm4562_vm2 = vmor %vm1252_vm12, %vm1511_vm9  ;;  %3622 = vpow2.f32 %v2949_v40  ;;  %v2950_v45 = vmul.f32 -1.442695, %v4567_v42  ;;  %v4630_v9 = vadd.f32 %v4540_v31, %v730_v3  ;;  %v3404_v18 = vpop.f32.mrb[1].mxu1 }
  0xf4   : > { %vm1586_vm3 = vmor %vm1253_vm13, %vm1512_vm0  ;;  %v733_v21 = vpop.f32.mrb[2].mxu1 }
  0xf5   : > { %v1170_v46 = vpop.permute.xlu1 %1169  ;;  %vm3050_vm4 = vmpackc.low %vm1586_vm3, %vm4555_vm15  ;;  %v1426_v2 = vpop.permute.xlu0 %1425  ;;  %3624 = vpow2.f32 %v2950_v45  ;;  %v2969_v20 = vmul.f32 -1.442695, %v4630_v9  ;;  %v4659_v25 = vadd.f32 %v4540_v31, %v733_v21 }
  0xf6   : > { %3051 = vmatprep.mubr.msk.bf16.mxu0 %vm3050_vm4, %v3986_v43  ;;  %vm3052_vm6 = vmpackc.low %vm4562_vm2, %vm4548_vm14  ;;  %vm1513_vm8 = vcmp.eq.s32.totalorder %v4348_v19, %v1426_v2  ;;  %vm1514_vm10 = vcmp.eq.s32.totalorder %v4353_v23, %v1426_v2  ;;  %vm1256_vm11 = vcmp.eq.s32.totalorder %v4348_v19, %v1170_v46  ;;  %v658_v47 = vpop.f32.mrb[4].mxu0  ;;  %vm1257_vm12 = vcmp.eq.s32.totalorder %v4353_v23, %v1170_v46  ;;  %v3405_v26 = vpop.f32.mrb[3].mxu1 }
  0xf7   : > { %vm4584_vm13 = vmor %vm1254_vm5, %vm1513_vm8  ;;  %v4589_v49 = vadd.f32 %v4540_v31, %v658_v47  ;;  %v3368_v51 = vpop.f32.mrb[5].mxu0  ;;  %v2970_v29 = vmul.f32 -1.442695, %v4659_v25 }
  0xf8   : > { %3053 = vmatmul.mubr.msk.bf16.gmra.mrb[80].mxu0 %vm3052_vm6, %v3986_v43  ;;  %vm4591_vm14 = vmor %vm1255_vm7, %vm1514_vm10  ;;  %v661_v53 = vpop.f32.mrb[6].mxu0 }
  0xf9   : > { %v1429_v50 = vpop.permute.xlu1 %1428  ;;  %v1173_v54 = vpop.permute.xlu0 %1172  ;;  %v2951_v55 = vmul.f32 -1.442695, %v4589_v49  ;;  %v4603_v57 = vadd.f32 %v4540_v31, %v661_v53 }
  0xfa   : > { %vm1515_vm15 = vcmp.eq.s32.totalorder %v4348_v19, %v1429_v50  ;;  %vm1516_vm9 = vcmp.eq.s32.totalorder %v4353_v23, %v1429_v50  ;;  %v3369_v58 = vpop.f32.mrb[7].mxu0  ;;  %vm1258_vm4 = vcmp.eq.s32.totalorder %v4348_v19, %v1173_v54  ;;  %vm1259_vm6 = vcmp.eq.s32.totalorder %v4353_v23, %v1173_v54  ;;  %v738_v33 = vpop.f32.mrb[4].mxu1 }
  0xfb   : > { %vm4598_vm0 = vmor %vm1256_vm11, %vm1515_vm15  ;;  %3626 = vpow2.f32 %v2951_v55  ;;  %v2952_v59 = vmul.f32 -1.442695, %v4603_v57  ;;  %v4684_v40 = vadd.f32 %v4540_v31, %v738_v33  ;;  %v3408_v51 = vpop.f32.mrb[5].mxu1 }
  0xfc   : > { %vm1590_vm2 = vmor %vm1257_vm12, %vm1516_vm9  ;;  %v741_v54 = vpop.f32.mrb[6].mxu1 }
  0xfd   : > { %v1176_v60 = vpop.permute.xlu1 %1175  ;;  %vm3054_vm3 = vmpackc.low %vm1590_vm2, %vm4591_vm14  ;;  %v1432_v61 = vpop.permute.xlu0 %1431  ;;  %3628 = vpow2.f32 %v2952_v59  ;;  %v2971_v53 = vmul.f32 -1.442695, %v4684_v40 }
  0xfe   : > { %3055 = vmatprep.mubr.msk.bf16.mxu0 %vm3054_vm3, %v3986_v43  ;;  %vm3056_vm5 = vmpackc.low %vm4598_vm0, %vm4584_vm13  ;;  %v3623_v62 = vpop.eup %3622  ;;  %vm1517_vm7 = vcmp.eq.s32.totalorder %v4348_v19, %v1432_v61  ;;  %vm1518_vm8 = vcmp.eq.s32.totalorder %v4353_v23, %v1432_v61  ;;  %vm1260_vm10 = vcmp.eq.s32.totalorder %v4348_v19, %v1176_v60  ;;  %v666_v0 = vpop.f32.mrb[8].mxu0  ;;  %vm1261_vm11 = vcmp.eq.s32.totalorder %v4353_v23, %v1176_v60 }
  0xff   : > { %v911_v63 = vadd.f32 1.0, %v3623_v62  ;;  %v3625_v4 = vpop.eup %3624  ;;  %vm4622_vm12 = vmor %vm1258_vm4, %vm1517_vm7  ;;  %v4627_v6 = vadd.f32 %v4540_v31, %v666_v0  ;;  %v3372_v8 = vpop.f32.mrb[9].mxu0 }
 0x100   : > { %3057 = vmatmul.mubr.msk.bf16.gmra.mrb[84].mxu0 %vm3056_vm5, %v3986_v43  ;;  %v912_v10 = vadd.f32 1.0, %v3625_v4  ;;  %vm4636_vm13 = vmor %vm1259_vm6, %vm1518_vm8  ;;  %v669_v12 = vpop.f32.mrb[10].mxu0  ;;  %v3409_v58 = vpop.f32.mrb[7].mxu1  ;;  %v4725_v4 = vadd.f32 %v4540_v31, %v741_v54 }
 0x101   : > { %v1435_v7 = vpop.permute.xlu1 %1434  ;;  %3630 = vrcp.f32 %v911_v63  ;;  %v1179_v13 = vpop.permute.xlu0 %1178  ;;  %v2953_v14 = vmul.f32 -1.442695, %v4627_v6  ;;  %v4650_v16 = vadd.f32 %v4540_v31, %v669_v12 }
 0x102   : > { %vm1519_vm14 = vcmp.eq.s32.totalorder %v4348_v19, %v1435_v7  ;;  %vm1520_vm15 = vcmp.eq.s32.totalorder %v4353_v23, %v1435_v7  ;;  %v3373_v17 = vpop.f32.mrb[11].mxu0  ;;  %3632 = vrcp.f32 %v912_v10  ;;  %vm1262_vm3 = vcmp.eq.s32.totalorder %v4348_v19, %v1179_v13  ;;  %v746_v5 = vpop.f32.mrb[8].mxu1 }
 0x103   : > { %vm4645_vm9 = vmor %vm1260_vm10, %vm1519_vm14  ;;  %3634 = vpow2.f32 %v2953_v14  ;;  %v2954_v22 = vmul.f32 -1.442695, %v4650_v16  ;;  %vm1263_vm4 = vcmp.eq.s32.totalorder %v4353_v23, %v1179_v13  ;;  %v2972_v36 = vmul.f32 -1.442695, %v4725_v4 }
 0x104   : > { %vm1594_vm0 = vmor %vm1261_vm11, %vm1520_vm15  ;;  %3636 = vpow2.f32 %v2969_v20 }
 0x105   : > { %v1182_v24 = vpop.permute.xlu1 %1181  ;;  %vm3058_vm2 = vmpackc.low %vm1594_vm0, %vm4636_vm13  ;;  %v1438_v27 = vpop.permute.xlu0 %1437  ;;  %3638 = vpow2.f32 %v2954_v22 }
 0x106   : > { %3059 = vmatprep.mubr.msk.bf16.mxu0 %vm3058_vm2, %v3986_v43  ;;  %vm3060_vm5 = vmpackc.low %vm4645_vm9, %vm4622_vm12  ;;  %v3627_v28 = vpop.eup %3626  ;;  %vm1521_vm6 = vcmp.eq.s32.totalorder %v4348_v19, %v1438_v27  ;;  %vm1522_vm7 = vcmp.eq.s32.totalorder %v4353_v23, %v1438_v27  ;;  %vm1264_vm8 = vcmp.eq.s32.totalorder %v4348_v19, %v1182_v24  ;;  %v674_v32 = vpop.f32.mrb[12].mxu0  ;;  %vm1265_vm10 = vcmp.eq.s32.totalorder %v4353_v23, %v1182_v24 }
 0x107   : > { %v913_v30 = vadd.f32 1.0, %v3627_v28  ;;  %v3629_v35 = vpop.eup %3628  ;;  %vm4676_vm11 = vmor %vm1262_vm3, %vm1521_vm6  ;;  %v4681_v37 = vadd.f32 %v4540_v31, %v674_v32  ;;  %v3376_v39 = vpop.f32.mrb[13].mxu0  ;;  %3640 = vpow2.f32 %v2970_v29 }
 0x108   : > { %3061 = vmatmul.mubr.msk.bf16.gmra.mrb[88].mxu0 %vm3060_vm5, %v3986_v43  ;;  %v914_v41 = vadd.f32 1.0, %v3629_v35  ;;  %vm4690_vm12 = vmor %vm1263_vm4, %vm1522_vm7  ;;  %v677_v45 = vpop.f32.mrb[14].mxu0  ;;  %v3412_v27 = vpop.f32.mrb[9].mxu1 }
 0x109   : > { %v1441_v38 = vpop.permute.xlu1 %1440  ;;  %3642 = vrcp.f32 %v913_v30  ;;  %v1185_v46 = vpop.permute.xlu0 %1184  ;;  %v2955_v2 = vmul.f32 -1.442695, %v4681_v37  ;;  %v4704_v48 = vadd.f32 %v4540_v31, %v677_v45 }
 0x10a   : > { %vm1523_vm13 = vcmp.eq.s32.totalorder %v4348_v19, %v1441_v38  ;;  %vm1524_vm14 = vcmp.eq.s32.totalorder %v4353_v23, %v1441_v38  ;;  %v3377_v50 = vpop.f32.mrb[15].mxu0  ;;  %3644 = vrcp.f32 %v914_v41  ;;  %vm1266_vm5 = vcmp.eq.s32.totalorder %v4348_v19, %v1185_v46  ;;  %v749_v32 = vpop.f32.mrb[10].mxu1 }
 0x10b   : > { %vm4699_vm15 = vmor %vm1264_vm8, %vm1523_vm13  ;;  %v3631_v52 = vpop.eup %3630  ;;  %3646 = vpow2.f32 %v2955_v2  ;;  %v2956_v55 = vmul.f32 -1.442695, %v4704_v48  ;;  %vm1267_vm6 = vcmp.eq.s32.totalorder %v4353_v23, %v1185_v46  ;;  %v4769_v38 = vadd.f32 %v4540_v31, %v746_v5  ;;  %v3413_v39 = vpop.f32.mrb[11].mxu1 }
 0x10c   : > { %vm1598_vm9 = vmor %vm1265_vm10, %vm1524_vm14  ;;  %v3633_v59 = vpop.eup %3632  ;;  %v1022_v60 = vmul.f32 %v3631_v52, %v4553_v34  ;;  %3648 = vpow2.f32 %v2971_v53  ;;  %v4785_v51 = vadd.f32 %v4540_v31, %v749_v32  ;;  %v754_v52 = vpop.f32.mrb[12].mxu1 }
 0x10d   : > { %v1188_v56 = vpop.permute.xlu1 %1187  ;;  %vm3062_vm0 = vmpackc.low %vm1598_vm9, %vm4690_vm12  ;;  %v1444_v61 = vpop.permute.xlu0 %1443  ;;  %v1023_v63 = vmul.f32 %v3633_v59, %v4567_v42  ;;  %3650 = vpow2.f32 %v2956_v55  ;;  %v2973_v8 = vmul.f32 -1.442695, %v4769_v38 }
 0x10e   : > { %3063 = vmatprep.mubr.msk.bf16.mxu0 %vm3062_vm0, %v3986_v43  ;;  %vm3064_vm2 = vmpackc.low %vm4699_vm15, %vm4676_vm11  ;;  %v3635_v62 = vpop.eup %3634  ;;  %vm1525_vm3 = vcmp.eq.s32.totalorder %v4348_v19, %v1444_v61  ;;  %vm1526_vm4 = vcmp.eq.s32.totalorder %v4353_v23, %v1444_v61  ;;  %v682_v34 = vpop.f32.mrb[16].mxu0  ;;  %vm1268_vm7 = vcmp.eq.s32.totalorder %v4348_v19, %v1188_v56  ;;  %vm1269_vm13 = vcmp.eq.s32.totalorder %v4353_v23, %v1188_v56 }
 0x10f   : > { %v3637_v0 = vpop.eup %3636  ;;  %v915_v3 = vadd.f32 1.0, %v3635_v62  ;;  %v1761_v42 = vpack.c.bf16 %v1023_v63, %v1022_v60  ;;  %vm4728_vm8 = vmor %vm1266_vm5, %vm1525_vm3  ;;  %v4733_v10 = vadd.f32 %v4540_v31, %v682_v34  ;;  %v3380_v12 = vpop.f32.mrb[17].mxu0 }
 0x110   : > { %3065 = vmatmul.mubr.msk.bf16.gmra.mrb[92].mxu0 %vm3064_vm2, %v3986_v43  ;;  %v3639_v7 = vpop.eup %3638  ;;  %v931_v13 = vadd.f32 1.0, %v3637_v0  ;;  %vm4739_vm10 = vmor %vm1267_vm6, %vm1526_vm4  ;;  %v685_v17 = vpop.f32.mrb[18].mxu0 }
 0x111   : > { %v1447_v11 = vpop.permute.xlu1 %1446  ;;  %3652 = vrcp.f32 %v915_v3  ;;  %v916_v14 = vadd.f32 1.0, %v3639_v7  ;;  %v1191_v18 = vpop.permute.xlu0 %1190  ;;  %v2957_v21 = vmul.f32 -1.442695, %v4733_v10  ;;  %v4754_v24 = vadd.f32 %v4540_v31, %v685_v17  ;;  %3455 = vmatmul.mubr.bf16.vlgmr.msra.gmra.mrb[36].mxu1 %v1761_v42 }
 0x112   : > { %vm1527_vm11 = vcmp.eq.s32.totalorder %v4348_v19, %v1447_v11  ;;  %vm1528_vm12 = vcmp.eq.s32.totalorder %v4353_v23, %v1447_v11  ;;  %v3641_v20 = vpop.eup %3640  ;;  %v3381_v26 = vpop.f32.mrb[19].mxu0  ;;  %3458 = vmatprep.mubr.msk.bf16.mxu1 %vm3985_vm1, %v3983_v1  ;;  %vm1270_vm0 = vcmp.eq.s32.totalorder %v4348_v19, %v1191_v18  ;;  %vm1271_vm2 = vcmp.eq.s32.totalorder %v4353_v23, %v1191_v18 }
 0x113   : > { %vm4749_vm14 = vmor %vm1268_vm7, %vm1527_vm11  ;;  %v3643_v28 = vpop.eup %3642  ;;  %3654 = vrcp.f32 %v916_v14  ;;  %v932_v30 = vadd.f32 1.0, %v3641_v20  ;;  %v2958_v33 = vmul.f32 -1.442695, %v4754_v24  ;;  %v3416_v7 = vpop.f32.mrb[13].mxu1  ;;  %v2974_v14 = vmul.f32 -1.442695, %v4785_v51 }
 0x114   : > { %vm4756_vm15 = vmor %vm1269_vm13, %vm1528_vm12  ;;  %3656 = vpow2.f32 %v2957_v21  ;;  %v3645_v41 = vpop.eup %3644  ;;  %v1024_v44 = vmul.f32 %v3643_v28, %v4589_v49  ;;  %v757_v11 = vpop.f32.mrb[14].mxu1  ;;  %v4832_v21 = vadd.f32 %v4540_v31, %v754_v52 }
 0x115   : > { %v1194_v35 = vpop.permute.xlu1 %1193  ;;  %vm3066_vm9 = vmpackc.low %vm4756_vm15, %vm4739_vm10  ;;  %v1450_v45 = vpop.permute.xlu0 %1449  ;;  %3658 = vrcp.f32 %v931_v13  ;;  %v1025_v2 = vmul.f32 %v3645_v41, %v4603_v57  ;;  %v4840_v29 = vadd.f32 %v4540_v31, %v757_v11 }
 0x116   : > { %3067 = vmatprep.mubr.msk.bf16.mxu0 %vm3066_vm9, %v3986_v43  ;;  %vm3068_vm3 = vmpackc.low %vm4749_vm14, %vm4728_vm8  ;;  %v3647_v46 = vpop.eup %3646  ;;  %3660 = vpow2.f32 %v2958_v33  ;;  %vm1529_vm4 = vcmp.eq.s32.totalorder %v4348_v19, %v1450_v45  ;;  %vm1530_vm5 = vcmp.eq.s32.totalorder %v4353_v23, %v1450_v45  ;;  %vm1272_vm6 = vcmp.eq.s32.totalorder %v4348_v19, %v1194_v35  ;;  %v690_v50 = vpop.f32.mrb[20].mxu0 }
 0x117   : > { %v3649_v49 = vpop.eup %3648  ;;  %v917_v47 = vadd.f32 1.0, %v3647_v46  ;;  %3662 = vrcp.f32 %v932_v30  ;;  %vm4789_vm7 = vmor %vm1270_vm0, %vm1529_vm4  ;;  %v4794_v54 = vadd.f32 %v4540_v31, %v690_v50  ;;  %v3384_v56 = vpop.f32.mrb[21].mxu0  ;;  %v1762_v58 = vpack.c.bf16 %v1025_v2, %v1024_v44 }
 0x118   : > { %3069 = vmatmul.mubr.msk.bf16.gmra.mrb[96].mxu0 %vm3068_vm3, %v3986_v43  ;;  %v3651_v53 = vpop.eup %3650  ;;  %v933_v59 = vadd.f32 1.0, %v3649_v49  ;;  %3664 = vpow2.f32 %v2972_v36  ;;  %vm4800_vm8 = vmor %vm1271_vm2, %vm1530_vm5  ;;  %v693_v62 = vpop.f32.mrb[22].mxu0  ;;  %vm1273_vm12 = vcmp.eq.s32.totalorder %v4353_v23, %v1194_v35  ;;  %v2975_v57 = vmul.f32 -1.442695, %v4832_v21 }
 0x119   : > { %v1453_v55 = vpop.permute.xlu1 %1452  ;;  %3666 = vrcp.f32 %v917_v47  ;;  %v918_v60 = vadd.f32 1.0, %v3651_v53  ;;  %v1197_v63 = vpop.permute.xlu0 %1196  ;;  %v2959_v0 = vmul.f32 -1.442695, %v4794_v54  ;;  %v4815_v34 = vadd.f32 %v4540_v31, %v693_v62  ;;  %3459 = vmatmul.mubr.bf16.gmra.mrb[40].mxu1 %v1762_v58 }
 0x11a   : > { %vm1531_vm10 = vcmp.eq.s32.totalorder %v4348_v19, %v1453_v55  ;;  %vm1532_vm11 = vcmp.eq.s32.totalorder %v4353_v23, %v1453_v55  ;;  %v3385_v5 = vpop.f32.mrb[23].mxu0  ;;  %3462 = vmatprep.mubr.msk.bf16.mxu1 %vm3985_vm1, %v3983_v1  ;;  %v3417_v15 = vpop.f32.mrb[15].mxu1  ;;  %vm1274_vm9 = vcmp.eq.s32.totalorder %v4348_v19, %v1197_v63  ;;  %vm1275_vm4 = vcmp.eq.s32.totalorder %v4353_v23, %v1197_v63 }
 0x11b   : > { %vm4810_vm13 = vmor %vm1272_vm6, %vm1531_vm10  ;;  %v3653_v42 = vpop.eup %3652  ;;  %3668 = vrcp.f32 %v918_v60  ;;  %v2960_v12 = vmul.f32 -1.442695, %v4815_v34  ;;  %v762_v30 = vpop.f32.mrb[16].mxu1 }
 0x11c   : > { %vm1606_vm14 = vmor %vm1273_vm12, %vm1532_vm11  ;;  %3670 = vpow2.f32 %v2959_v0  ;;  %v1026_v18 = vmul.f32 %v3653_v42, %v4627_v6  ;;  %v3420_v55 = vpop.f32.mrb[17].mxu1  ;;  %v4901_v42 = vadd.f32 %v4540_v31, %v762_v30 }
 0x11d   : > { %v1200_v13 = vpop.permute.xlu1 %1199  ;;  %vm3070_vm15 = vmpackc.low %vm1606_vm14, %vm4800_vm8  ;;  %v3655_v17 = vpop.eup %3654  ;;  %3672 = vrcp.f32 %v933_v59 }
 0x11e   : > { %3071 = vmatprep.mubr.msk.bf16.mxu0 %vm3070_vm15, %v3986_v43  ;;  %vm3072_vm0 = vmpackc.low %vm4810_vm13, %vm4789_vm7  ;;  %v1456_v20 = vpop.permute.xlu0 %1455  ;;  %v3657_v22 = vpop.eup %3656  ;;  %v1027_v26 = vmul.f32 %v3655_v17, %v4650_v16  ;;  %3674 = vpow2.f32 %v2960_v12  ;;  %vm1276_vm5 = vcmp.eq.s32.totalorder %v4348_v19, %v1200_v13  ;;  %vm1277_vm11 = vcmp.eq.s32.totalorder %v4353_v23, %v1200_v13 }
 0x11f   : > { %vm1533_vm2 = vcmp.eq.s32.totalorder %v4348_v19, %v1456_v20  ;;  %vm1534_vm3 = vcmp.eq.s32.totalorder %v4353_v23, %v1456_v20  ;;  %v3659_v6 = vpop.eup %3658  ;;  %v919_v27 = vadd.f32 1.0, %v3657_v22  ;;  %v698_v28 = vpop.f32.mrb[24].mxu0  ;;  %3676 = vpow2.f32 %v2973_v8 }
 0x120   : > { %3073 = vmatmul.mubr.msk.bf16.gmra.mrb[100].mxu0 %vm3072_vm0, %v3986_v43  ;;  %v3661_v32 = vpop.eup %3660  ;;  %vm4845_vm6 = vmor %vm1274_vm9, %vm1533_vm2  ;;  %v4850_v33 = vadd.f32 %v4540_v31, %v698_v28  ;;  %v3388_v36 = vpop.f32.mrb[25].mxu0  ;;  %v1763_v39 = vpack.c.bf16 %v1027_v26, %v1026_v18  ;;  %3678 = vpow2.f32 %v2974_v14  ;;  %v4879_v59 = vmul.f32 %v3659_v6, %v4630_v9 }
 0x121   : > { %v1459_v35 = vpop.permute.xlu1 %1458  ;;  %v3663_v41 = vpop.eup %3662  ;;  %3680 = vrcp.f32 %v919_v27  ;;  %v920_v44 = vadd.f32 1.0, %v3661_v32  ;;  %vm4856_vm7 = vmor %vm1275_vm4, %vm1534_vm3  ;;  %v2976_v9 = vmul.f32 -1.442695, %v4840_v29  ;;  %v2977_v55 = vmul.f32 -1.442695, %v4901_v42 }
 0x122   : > { %vm1535_vm8 = vcmp.eq.s32.totalorder %v4348_v19, %v1459_v35  ;;  %vm1536_vm10 = vcmp.eq.s32.totalorder %v4353_v23, %v1459_v35  ;;  %v701_v46 = vpop.f32.mrb[26].mxu0  ;;  %v1203_v2 = vpop.permute.xlu0 %1202  ;;  %v2961_v47 = vmul.f32 -1.442695, %v4850_v33  ;;  %3463 = vmatmul.mubr.bf16.gmra.mrb[44].mxu1 %v1763_v39  ;;  %v4882_v60 = vmul.f32 %v3663_v41, %v4659_v25 }
 0x123   : > { %v3665_v49 = vpop.eup %3664  ;;  %vm4866_vm12 = vmor %vm1276_vm5, %vm1535_vm8  ;;  %v4871_v52 = vadd.f32 %v4540_v31, %v701_v46  ;;  %v3389_v53 = vpop.f32.mrb[27].mxu0  ;;  %3682 = vrcp.f32 %v920_v44  ;;  %3466 = vmatprep.mubr.msk.bf16.mxu1 %vm3985_vm1, %v3983_v1  ;;  %vm1278_vm14 = vcmp.eq.s32.totalorder %v4348_v19, %v1203_v2  ;;  %vm1279_vm9 = vcmp.eq.s32.totalorder %v4353_v23, %v1203_v2 }
 0x124   : > { %v3667_v56 = vpop.eup %3666  ;;  %vm4874_vm13 = vmor %vm1277_vm11, %vm1536_vm10  ;;  %v934_v61 = vadd.f32 1.0, %v3665_v49  ;;  %v765_v62 = vpop.f32.mrb[18].mxu1  ;;  %3684 = vpow2.f32 %v2961_v47  ;;  %v1771_v17 = vpack.c.bf16 %v4882_v60, %v4879_v59  ;;  %v3918_v59 = vld [vmem:[%s5499_s4] ss:$0 sm:$0xff] }
 0x125   : > { %v2962_v63 = vmul.f32 -1.442695, %v4871_v52  ;;  %v1206_v0 = vpop.permute.xlu1 %1205  ;;  %vm3074_vm15 = vmpackc.low %vm4874_vm13, %vm4856_vm7  ;;  %v3421_v25 = vpop.f32.mrb[19].mxu1  ;;  %v1028_v5 = vmul.f32 %v3667_v56, %v4681_v37  ;;  %v4908_v14 = vadd.f32 %v4540_v31, %v765_v62 }
 0x126   : > { %v3669_v3 = vpop.eup %3668  ;;  %3075 = vmatprep.mubr.msk.bf16.mxu0 %vm3074_vm15, %v3986_v43  ;;  %vm3076_vm0 = vmpackc.low %vm4866_vm12, %vm4845_vm6  ;;  %v1462_v7 = vpop.permute.xlu0 %1461  ;;  %3686 = vrcp.f32 %v934_v61  ;;  %vm1280_vm4 = vcmp.eq.s32.totalorder %v4348_v19, %v1206_v0  ;;  %vm1281_vm10 = vcmp.eq.s32.totalorder %v4353_v23, %v1206_v0 }
 0x127   : > { %v3671_v8 = vpop.eup %3670  ;;  %v1029_v11 = vmul.f32 %v3669_v3, %v4704_v48  ;;  %3688 = vpow2.f32 %v2962_v63  ;;  %vm1537_vm2 = vcmp.eq.s32.totalorder %v4348_v19, %v1462_v7  ;;  %vm1538_vm3 = vcmp.eq.s32.totalorder %v4353_v23, %v1462_v7  ;;  %v706_v13 = vpop.f32.mrb[28].mxu0 }
 0x128   : > { %v3673_v37 = vpop.eup %3672  ;;  %v921_v12 = vadd.f32 1.0, %v3671_v8  ;;  %3077 = vmatmul.mubr.msk.bf16.gmra.mrb[104].mxu0 %vm3076_vm0, %v3986_v43  ;;  %3690 = vpow2.f32 %v2975_v57  ;;  %v770_v15 = vpop.f32.mrb[20].mxu1  ;;  %vm4915_vm5 = vmor %vm1278_vm14, %vm1537_vm2  ;;  %v4920_v20 = vadd.f32 %v4540_v31, %v706_v13  ;;  %v2978_v62 = vmul.f32 -1.442695, %v4908_v14 }
 0x129   : > { %v3675_v18 = vpop.eup %3674  ;;  %v1465_v22 = vpop.permute.xlu1 %1464  ;;  %v1764_v6 = vpack.c.bf16 %v1029_v11, %v1028_v5  ;;  %3692 = vpow2.f32 %v2976_v9  ;;  %vm4926_vm6 = vmor %vm1279_vm9, %vm1538_vm3  ;;  %v4956_v61 = vmul.f32 %v3673_v37, %v4684_v40  ;;  %v4975_v7 = vadd.f32 %v4540_v31, %v770_v15 }
 0x12a   : > { %v3392_v26 = vpop.f32.mrb[29].mxu0  ;;  %v3677_v27 = vpop.eup %3676  ;;  %3694 = vrcp.f32 %v921_v12  ;;  %v922_v28 = vadd.f32 1.0, %v3675_v18  ;;  %vm1539_vm7 = vcmp.eq.s32.totalorder %v4348_v19, %v1465_v22  ;;  %vm1540_vm8 = vcmp.eq.s32.totalorder %v4353_v23, %v1465_v22 }
 0x12b   : > { %v709_v32 = vpop.f32.mrb[30].mxu0  ;;  %v3679_v16 = vpop.eup %3678  ;;  %v2963_v35 = vmul.f32 -1.442695, %v4920_v20  ;;  %vm4936_vm11 = vmor %vm1280_vm4, %vm1539_vm7  ;;  %3467 = vmatmul.mubr.bf16.gmra.mrb[48].mxu1 %v1764_v6  ;;  %v935_v49 = vadd.f32 1.0, %v3677_v27 }
 0x12c   : > { %v4941_v39 = vadd.f32 %v4540_v31, %v709_v32  ;;  %v3393_v41 = vpop.f32.mrb[31].mxu0  ;;  %v3424_v44 = vpop.f32.mrb[21].mxu1  ;;  %3696 = vrcp.f32 %v922_v28  ;;  %vm4943_vm12 = vmor %vm1281_vm10, %vm1540_vm8  ;;  %3470 = vmatprep.mubr.msk.bf16.mxu1 %vm3985_vm1, %v3983_v1  ;;  %v936_v47 = vadd.f32 1.0, %v3679_v16 }
 0x12d   : > { %v3681_v45 = vpop.eup %3680  ;;  %v1209_v2 = vpop.permute.xlu0 %1208  ;;  %3698 = vpow2.f32 %v2963_v35  ;;  %vm3078_vm13 = vmpackc.low %vm4943_vm12, %vm4926_vm6  ;;  %v2979_v41 = vmul.f32 -1.442695, %v4975_v7 }
 0x12e   : > { %v773_v50 = vpop.f32.mrb[22].mxu1  ;;  %v2964_v53 = vmul.f32 -1.442695, %v4941_v39  ;;  %v1468_v57 = vpop.permute.xlu1 %1467  ;;  %3079 = vmatprep.mubr.msk.bf16.mxu0 %vm3078_vm13, %v3986_v43  ;;  %vm3080_vm15 = vmpackc.low %vm4936_vm11, %vm4915_vm5  ;;  %3700 = vrcp.f32 %v935_v49  ;;  %v1030_v0 = vmul.f32 %v3681_v45, %v4733_v10  ;;  %vm1283_vm9 = vcmp.eq.s32.totalorder %v4353_v23, %v1209_v2 }
 0x12f   : > { %v3425_v56 = vpop.f32.mrb[23].mxu1  ;;  %v3683_v58 = vpop.eup %3682  ;;  %vm1542_vm14 = vcmp.eq.s32.totalorder %v4353_v23, %v1468_v57  ;;  %vm1541_vm0 = vcmp.eq.s32.totalorder %v4348_v19, %v1468_v57  ;;  %vm1282_vm4 = vcmp.eq.s32.totalorder %v4348_v19, %v1209_v2  ;;  %v4989_v48 = vadd.f32 %v4540_v31, %v773_v50 }
 0x130   : > { %v3685_v63 = vpop.eup %3684  ;;  %v1031_v9 = vmul.f32 %v3683_v58, %v4754_v24  ;;  %3702 = vpow2.f32 %v2964_v53  ;;  %vm4969_vm2 = vmor %vm1283_vm9, %vm1542_vm14  ;;  %3081 = vmatmul.mubr.msk.bf16.gmra.mrb[108].mxu0 %vm3080_vm15, %v3986_v43  ;;  %v714_v5 = vpop.f32.mrb[32].mxu0 }
 0x131   : > { %v3687_v40 = vpop.eup %3686  ;;  %v923_v25 = vadd.f32 1.0, %v3685_v63  ;;  %3704 = vrcp.f32 %v936_v47  ;;  %v778_v10 = vpop.f32.mrb[24].mxu1  ;;  %vm3082_vm3 = vmpackc.low %vm4969_vm2, %vm4969_vm2  ;;  %v4984_v8 = vadd.f32 %v4540_v31, %v714_v5  ;;  %v2980_v49 = vmul.f32 -1.442695, %v4989_v48 }
 0x132   : > { %v3689_v24 = vpop.eup %3688  ;;  %v4981_v23 = vmul.f32 %v3687_v40, %v4725_v4  ;;  %v3396_v11 = vpop.f32.mrb[33].mxu0  ;;  %v1765_v37 = vpack.c.bf16 %v1031_v9, %v1030_v0  ;;  %3706 = vpow2.f32 %v2977_v55  ;;  %3083 = vmatprep.mubr.msk.bf16.mxu0 %vm3082_vm3, %v3986_v43  ;;  %vm4999_vm5 = vmor %vm1282_vm4, %vm1541_vm0  ;;  %v5017_v57 = vadd.f32 %v4540_v31, %v778_v10 }
 0x133   : > { %v3428_v12 = vpop.f32.mrb[25].mxu1  ;;  %v3691_v13 = vpop.eup %3690  ;;  %3708 = vrcp.f32 %v923_v25  ;;  %v924_v15 = vadd.f32 1.0, %v3689_v24  ;;  %v2965_v26 = vmul.f32 -1.442695, %v4984_v8  ;;  %vm3084_vm6 = vmpackc.low %vm4999_vm5, %vm4999_vm5 }
 0x134   : > { %v717_v18 = vpop.f32.mrb[34].mxu0  ;;  %v781_v4 = vpop.f32.mrb[26].mxu1  ;;  %3471 = vmatmul.mubr.bf16.gmra.mrb[52].mxu1 %v1765_v37  ;;  %v937_v28 = vadd.f32 1.0, %v3691_v13  ;;  %3710 = vpow2.f32 %v2978_v62  ;;  %v1772_v44 = vpack.c.bf16 %v4981_v23, %v4956_v61  ;;  %v2981_v13 = vmul.f32 -1.442695, %v5017_v57 }
 0x135   : > { %v3693_v22 = vpop.eup %3692  ;;  %v4993_v6 = vadd.f32 %v4540_v31, %v717_v18  ;;  %v3397_v27 = vpop.f32.mrb[35].mxu0  ;;  %3712 = vrcp.f32 %v924_v15  ;;  %3474 = vmatprep.mubr.msk.bf16.mxu1 %vm3985_vm1, %v3983_v1  ;;  %v5026_v40 = vadd.f32 %v4540_v31, %v781_v4 }
 0x136   : > { %v3429_v30 = vpop.f32.mrb[27].mxu1  ;;  %v3695_v32 = vpop.eup %3694  ;;  %v938_v35 = vadd.f32 1.0, %v3693_v22  ;;  %3714 = vpow2.f32 %v2965_v26 }
 0x137   : > { %v2966_v36 = vmul.f32 -1.442695, %v4993_v6  ;;  %v3697_v45 = vpop.eup %3696  ;;  %3716 = vrcp.f32 %v937_v28  ;;  %v1032_v19 = vmul.f32 %v3695_v32, %v4794_v54  ;;  %v722_v53 = vpop.f32.mrb[36].mxu0  ;;  %v2982_v27 = vmul.f32 -1.442695, %v5026_v40 }
 0x138   : > { %v3699_v46 = vpop.eup %3698  ;;  %v1033_v2 = vmul.f32 %v3697_v45, %v4815_v34  ;;  %3085 = vmatmul.mubr.msk.bf16.gmra.mrb[112].mxu0 %vm3084_vm6, %v3986_v43  ;;  %v786_v55 = vpop.f32.mrb[28].mxu1  ;;  %v5023_v56 = vadd.f32 %v4540_v31, %v722_v53 }
 0x139   : > { %3718 = vpow2.f32 %v2966_v36  ;;  %v3701_v47 = vpop.eup %3700  ;;  %v925_v50 = vadd.f32 1.0, %v3699_v46  ;;  %v3400_v58 = vpop.f32.mrb[37].mxu0  ;;  %v5040_v18 = vadd.f32 %v4540_v31, %v786_v55 }
 0x13a   : > { %3720 = vrcp.f32 %v938_v35  ;;  %v3703_v54 = vpop.eup %3702  ;;  %v5020_v34 = vmul.f32 %v3701_v47, %v4769_v38  ;;  %v1766_v62 = vpack.c.bf16 %v1033_v2, %v1032_v19  ;;  %v3432_v63 = vpop.f32.mrb[29].mxu1  ;;  %v2967_v38 = vmul.f32 -1.442695, %v5023_v56 }
 0x13b   : > { %3722 = vpow2.f32 %v2979_v41  ;;  %v3705_v0 = vpop.eup %3704  ;;  %v926_v43 = vadd.f32 1.0, %v3703_v54  ;;  %v725_v9 = vpop.f32.mrb[38].mxu0  ;;  %v2983_v2 = vmul.f32 -1.442695, %v5040_v18 }
 0x13c   : > { %3724 = vrcp.f32 %v925_v50  ;;  %v789_v25 = vpop.f32.mrb[30].mxu1  ;;  %v3707_v3 = vpop.eup %3706  ;;  %v5029_v5 = vmul.f32 %v3705_v0, %v4785_v51  ;;  %v5033_v10 = vadd.f32 %v4540_v31, %v725_v9  ;;  %3475 = vmatmul.mubr.bf16.gmra.mrb[56].mxu1 %v1766_v62 }
 0x13d   : > { %v3401_v24 = vpop.f32.mrb[39].mxu0  ;;  %3726 = vpow2.f32 %v2980_v49  ;;  %v3433_v11 = vpop.f32.mrb[31].mxu1  ;;  %3478 = vmatprep.mubr.msk.bf16.mxu1 %vm3985_vm1, %v3983_v1  ;;  %v939_v12 = vadd.f32 1.0, %v3707_v3  ;;  %v5048_v16 = vadd.f32 %v4540_v31, %v789_v25 }
 0x13e   : > { %v3709_v37 = vpop.eup %3708  ;;  %3728 = vrcp.f32 %v926_v43  ;;  %v2968_v51 = vmul.f32 -1.442695, %v5033_v10  ;;  %v1773_v4 = vpack.c.bf16 %v5029_v5, %v5020_v34  ;;  %v5050_v41 = vpop.f32.mrb[32].mxu1 }
 0x13f   : > { %v3711_v15 = vpop.eup %3710  ;;  %3730 = vpow2.f32 %v2967_v38  ;;  %v1034_v30 = vmul.f32 %v3709_v37, %v4850_v33  ;;  %v3436_v33 = vpop.f32.mrb[33].mxu1  ;;  %v2984_v53 = vmul.f32 -1.442695, %v5048_v16  ;;  %v795_v60 = vadd.f32 %v3918_v59, %v5050_v41 }
 0x140   : > { %v3713_v22 = vpop.eup %3712  ;;  %3732 = vrcp.f32 %v939_v12  ;;  %v940_v26 = vadd.f32 1.0, %v3711_v15  ;;  %v797_v47 = vpop.f32.mrb[34].mxu1 }
 0x141   : > { %v3715_v28 = vpop.eup %3714  ;;  %v1035_v32 = vmul.f32 %v3713_v22, %v4871_v52  ;;  %3734 = vpow2.f32 %v2968_v51  ;;  %v3437_v55 = vpop.f32.mrb[35].mxu1 }
 0x142   : > { %v3717_v35 = vpop.eup %3716  ;;  %v927_v36 = vadd.f32 1.0, %v3715_v28  ;;  %3736 = vrcp.f32 %v940_v26 }
 0x143   : > { %v3719_v45 = vpop.eup %3718  ;;  %v5053_v46 = vmul.f32 %v3717_v35, %v4832_v21  ;;  %v1767_v19 = vpack.c.bf16 %v1035_v32, %v1034_v30  ;;  %3738 = vpow2.f32 %v2981_v13 }
 0x144   : > { %v3721_v49 = vpop.eup %3720  ;;  %3740 = vrcp.f32 %v927_v36  ;;  %v928_v52 = vadd.f32 1.0, %v3719_v45 }
 0x145   : > { %v3723_v31 = vpop.eup %3722  ;;  %v5057_v50 = vmul.f32 %v3721_v49, %v4840_v29  ;;  %3479 = vmatmul.mubr.bf16.gmra.mrb[60].mxu1 %v1767_v19  ;;  %3742 = vpow2.f32 %v2982_v27 }
 0x146   : > { %v3725_v21 = vpop.eup %3724  ;;  %3744 = vrcp.f32 %v928_v52  ;;  %3482 = vmatprep.mubr.msk.bf16.mxu1 %vm3985_vm1, %v3983_v1  ;;  %v941_v54 = vadd.f32 1.0, %v3723_v31 }
 0x147   : > { %v3727_v58 = vpop.eup %3726  ;;  %3746 = vpow2.f32 %v2983_v2  ;;  %v1774_v62 = vpack.c.bf16 %v5057_v50, %v5053_v46  ;;  %v1036_v43 = vmul.f32 %v3725_v21, %v4920_v20 }
 0x148   : > { %v3729_v63 = vpop.eup %3728  ;;  %3748 = vrcp.f32 %v941_v54  ;;  %v942_v29 = vadd.f32 1.0, %v3727_v58 }
 0x149   : > { %v3731_v0 = vpop.eup %3730  ;;  %v1037_v9 = vmul.f32 %v3729_v63, %v4941_v39  ;;  %3750 = vpow2.f32 %v2984_v53 }
 0x14a   : > { %v3733_v25 = vpop.eup %3732  ;;  %v929_v3 = vadd.f32 1.0, %v3731_v0  ;;  %3752 = vrcp.f32 %v942_v29 }
 0x14b   : > { %v3735_v38 = vpop.eup %3734  ;;  %v5067_v24 = vmul.f32 %v3733_v25, %v4901_v42  ;;  %v1768_v11 = vpack.c.bf16 %v1037_v9, %v1036_v43 }
 0x14c   : > { %v3737_v37 = vpop.eup %3736  ;;  %3754 = vrcp.f32 %v929_v3  ;;  %v930_v12 = vadd.f32 1.0, %v3735_v38 }
 0x14d   : > { %v3739_v13 = vpop.eup %3738  ;;  %v1051_v15 = vmul.f32 %v3737_v37, %v4908_v14  ;;  %3483 = vmatmul.mubr.bf16.gmra.mrb[64].mxu1 %v1768_v11 }
 0x14e   : > { %v3741_v51 = vpop.eup %3740  ;;  %3756 = vrcp.f32 %v930_v12  ;;  %3486 = vmatprep.mubr.msk.bf16.mxu1 %vm3985_vm1, %v3983_v1  ;;  %v943_v20 = vadd.f32 1.0, %v3739_v13 }
 0x14f   : > { %v3743_v39 = vpop.eup %3742  ;;  %v1775_v22 = vpack.c.bf16 %v1051_v15, %v5067_v24  ;;  %v1038_v28 = vmul.f32 %v3741_v51, %v4984_v8 }
 0x150   : > { %v3745_v26 = vpop.eup %3744  ;;  %3758 = vrcp.f32 %v943_v20  ;;  %v944_v42 = vadd.f32 1.0, %v3743_v39 }
 0x151   : > { %v3747_v27 = vpop.eup %3746  ;;  %v1039_v30 = vmul.f32 %v3745_v26, %v4993_v6 }
 0x152   : > { %v3749_v32 = vpop.eup %3748  ;;  %3760 = vrcp.f32 %v944_v42  ;;  %v945_v14 = vadd.f32 1.0, %v3747_v27 }
 0x153   : > { %v3751_v35 = vpop.eup %3750  ;;  %v1052_v36 = vmul.f32 %v3749_v32, %v4975_v7  ;;  %v1769_v45 = vpack.c.bf16 %v1039_v30, %v1038_v28 }
 0x154   : > { %v3753_v19 = vpop.eup %3752  ;;  %3762 = vrcp.f32 %v945_v14  ;;  %v946_v2 = vadd.f32 1.0, %v3751_v35 }
 0x155   : > { %v1053_v33 = vmul.f32 %v3753_v19, %v4989_v48  ;;  %3487 = vmatmul.mubr.bf16.gmra.mrb[68].mxu1 %v1769_v45 }
 0x156   : > { %v3755_v49 = vpop.eup %3754  ;;  %3490 = vmatprep.mubr.msk.bf16.mxu1 %vm3985_vm1, %v3983_v1  ;;  %3764 = vrcp.f32 %v946_v2 }
 0x157   : > { %v1776_v8 = vpack.c.bf16 %v1053_v33, %v1052_v36  ;;  %v1040_v52 = vmul.f32 %v3755_v49, %v5023_v56 }
 0x158   : > { %v3757_v6 = vpop.eup %3756 }
 0x159   : > { %v1041_v47 = vmul.f32 %v3757_v6, %v5033_v10 }
 0x15a   : > { %v3759_v31 = vpop.eup %3758 }
 0x15b   : > { %v1054_v7 = vmul.f32 %v3759_v31, %v5017_v57  ;;  %v1770_v53 = vpack.c.bf16 %v1041_v47, %v1040_v52 }
 0x15c   : > { %v3761_v55 = vpop.eup %3760 }
 0x15d   : > { %v1055_v21 = vmul.f32 %v3761_v55, %v5026_v40  ;;  %3491 = vmatmul.mubr.bf16.gmra.mrb[72].mxu1 %v1770_v53 }
 0x15e   : > { %v3763_v48 = vpop.eup %3762  ;;  %3494 = vmatprep.mubr.msk.bf16.mxu1 %vm3985_vm1, %v3983_v1 }
 0x15f   : > { %v1056_v54 = vmul.f32 %v3763_v48, %v5040_v18  ;;  %v1777_v58 = vpack.c.bf16 %v1055_v21, %v1054_v7 }
 0x160   : > { %v3765_v63 = vpop.eup %3764 }
 0x161   : > { %v1057_v56 = vmul.f32 %v3765_v63, %v5048_v16 }
 0x163   : > { %v1778_v29 = vpack.c.bf16 %v1057_v56, %v1056_v54 }
 0x165   : > { %3495 = vmatmul.mubr.bf16.gmra.mrb[76].mxu1 %v1771_v17  ;;  %v2985_v17 = vmul.f32 -1.442695, %v795_v60 }
 0x166   : > { %3498 = vmatprep.mubr.msk.bf16.mxu1 %vm3985_vm1, %v3983_v1 }
 0x167   : > { %3766 = vpow2.f32 %v2985_v17 }
 0x16d   : > { %3499 = vmatmul.mubr.bf16.gmra.mrb[80].mxu1 %v1772_v44 }
 0x16e   : > { %3502 = vmatprep.mubr.msk.bf16.mxu1 %vm3985_vm1, %v3983_v1 }
 0x171   : > { %v3767_v18 = vpop.eup %3766 }
 0x172   : > { %v947_v16 = vadd.f32 1.0, %v3767_v18 }
 0x174   : > { %3768 = vrcp.f32 %v947_v16 }
 0x175   : > { %3503 = vmatmul.mubr.bf16.gmra.mrb[84].mxu1 %v1773_v4 }
 0x176   : > { %3506 = vmatprep.mubr.msk.bf16.mxu1 %vm3985_vm1, %v3983_v1 }
 0x17b   : > { %v5109_v61 = vpop.f32.mrb[40].mxu0 }
 0x17c   : > { %v2160_v23 = vpop.f32.mrb[41].mxu0 }
 0x17d   : > { %3507 = vmatmul.mubr.bf16.gmra.mrb[88].mxu1 %v1774_v62  ;;  %v5113_v44 = vpop.f32.mrb[42].mxu0 }
 0x17e   : > { %3510 = vmatprep.mubr.msk.bf16.mxu1 %vm3985_vm1, %v3983_v1  ;;  %v2163_v57 = vpop.f32.mrb[43].mxu0  ;;  %v3769_v25 = vpop.eup %3768 }
 0x17f   : > { %v1058_v24 = vmul.f32 %v3769_v25, %v795_v60  ;;  %v5179_v60 = vld [vmem:[%s5502_s7] ss:$0 sm:$0xff] }
 0x181   : > { %v1779_v12 = vpack.c.bf16 %v1058_v24, %v1058_v24 }
 0x183   : > { %v5115_v34 = vpop.f32.mrb[44].mxu0 }
 0x184   : > { %v2168_v40 = vpop.f32.mrb[45].mxu0 }
 0x185   : > { %3511 = vmatmul.mubr.bf16.gmra.mrb[92].mxu1 %v1775_v22  ;;  %v5119_v5 = vpop.f32.mrb[46].mxu0 }
 0x186   : > { %3514 = vmatprep.mubr.msk.bf16.mxu1 %vm3985_vm1, %v3983_v1  ;;  %v2171_v10 = vpop.f32.mrb[47].mxu0 }
 0x18b   : > { %v5122_v4 = vpop.f32.mrb[48].mxu0 }
 0x18c   : > { %v2176_v41 = vpop.f32.mrb[49].mxu0 }
 0x18d   : > { %3515 = vmatmul.mubr.bf16.gmra.mrb[96].mxu1 %v1776_v8  ;;  %v5126_v46 = vpop.f32.mrb[50].mxu0 }
 0x18e   : > { %3518 = vmatprep.mubr.msk.bf16.mxu1 %vm3985_vm1, %v3983_v1  ;;  %v2179_v50 = vpop.f32.mrb[51].mxu0 }
 0x193   : > { %v5128_v62 = vpop.f32.mrb[52].mxu0 }
 0x194   : > { %v2184_v0 = vpop.f32.mrb[53].mxu0 }
 0x195   : > { %3519 = vmatmul.mubr.bf16.gmra.mrb[100].mxu1 %v1777_v58  ;;  %v5132_v43 = vpop.f32.mrb[54].mxu0 }
 0x196   : > { %3522 = vmatprep.mubr.msk.bf16.mxu1 %vm3985_vm1, %v3983_v1  ;;  %v2187_v9 = vpop.f32.mrb[55].mxu0 }
 0x19b   : > { %v5134_v3 = vpop.f32.mrb[56].mxu0 }
 0x19c   : > { %v2192_v38 = vpop.f32.mrb[57].mxu0 }
 0x19d   : > { %3523 = vmatmul.mubr.bf16.gmra.mrb[104].mxu1 %v1778_v29  ;;  %v5138_v11 = vpop.f32.mrb[58].mxu0 }
 0x19e   : > { %3526 = vmatprep.mubr.msk.bf16.mxu1 %vm3985_vm1, %v3983_v1  ;;  %v2195_v37 = vpop.f32.mrb[59].mxu0 }
 0x1a3   : > { %v5140_v13 = vpop.f32.mrb[60].mxu0 }
 0x1a4   : > { %v2200_v15 = vpop.f32.mrb[61].mxu0 }
 0x1a5   : > { %3527 = vmatmul.mubr.bf16.gmra.mrb[108].mxu1 %v1779_v12  ;;  %v5142_v51 = vpop.f32.mrb[62].mxu0 }
 0x1a6   : > { %v2203_v20 = vpop.f32.mrb[63].mxu0 }
 0x1ab   : > { %v5144_v39 = vpop.f32.mrb[64].mxu0 }
 0x1ac   : > { %v2208_v22 = vpop.f32.mrb[65].mxu0 }
 0x1ad   : > { %v5146_v26 = vpop.f32.mrb[66].mxu0 }
 0x1ae   : > { %v2211_v42 = vpop.f32.mrb[67].mxu0 }
 0x1b3   : > { %v5148_v1 = vpop.f32.mrb[68].mxu0 }
 0x1b4   : > { %v2216_v27 = vpop.f32.mrb[69].mxu0 }
 0x1b5   : > { %v5150_v28 = vpop.f32.mrb[70].mxu0 }
 0x1b6   : > { %v2219_v30 = vpop.f32.mrb[71].mxu0 }
 0x1bb   : > { %v5152_v32 = vpop.f32.mrb[72].mxu0 }
 0x1bc   : > { %v2224_v14 = vpop.f32.mrb[73].mxu0 }
 0x1bd   : > { %v5154_v35 = vpop.f32.mrb[74].mxu0 }
 0x1be   : > { %v2227_v36 = vpop.f32.mrb[75].mxu0 }
 0x1c3   : > { %v5156_v45 = vpop.f32.mrb[76].mxu0 }
 0x1c4   : > { %v2232_v19 = vpop.f32.mrb[77].mxu0 }
 0x1c5   : > { %v5158_v2 = vpop.f32.mrb[78].mxu0 }
 0x1c6   : > { %v2235_v33 = vpop.f32.mrb[79].mxu0 }
 0x1cb   : > { %v5160_v49 = vpop.f32.mrb[80].mxu0 }
 0x1cc   : > { %v2240_v8 = vpop.f32.mrb[81].mxu0 }
 0x1cd   : > { %v5162_v6 = vpop.f32.mrb[82].mxu0 }
 0x1ce   : > { %v2243_v52 = vpop.f32.mrb[83].mxu0 }
 0x1d3   : > { %v5164_v47 = vpop.f32.mrb[84].mxu0 }
 0x1d4   : > { %v2248_v31 = vpop.f32.mrb[85].mxu0 }
 0x1d5   : > { %v5166_v7 = vpop.f32.mrb[86].mxu0 }
 0x1d6   : > { %v2251_v53 = vpop.f32.mrb[87].mxu0 }
 0x1db   : > { %v5168_v55 = vpop.f32.mrb[88].mxu0 }
 0x1dc   : > { %v2256_v21 = vpop.f32.mrb[89].mxu0 }
 0x1dd   : > { %v5170_v48 = vpop.f32.mrb[90].mxu0 }
 0x1de   : > { %v2259_v54 = vpop.f32.mrb[91].mxu0 }
 0x1e3   : > { %v5172_v58 = vpop.f32.mrb[92].mxu0 }
 0x1e4   : > { %v2264_v63 = vpop.f32.mrb[93].mxu0  ;;  %v1878_v59 = vpop.f32.mrb[36].mxu1 }
 0x1e5   : > { %v5174_v56 = vpop.f32.mrb[94].mxu0  ;;  %v2159_v17 = vadd.f32 %v5109_v61, %v1878_v59  ;;  %v3456_v23 = vpop.f32.mrb[37].mxu1 }
 0x1e6   : > { %v2267_v29 = vpop.f32.mrb[95].mxu0  ;;  %v1881_v57 = vpop.f32.mrb[38].mxu1 }
 0x1e7   : > { %v5183_v40 = vadd.f32 %v5179_v60, %v2159_v17  ;;  %v2162_v10 = vadd.f32 %v5113_v44, %v1881_v57  ;;  %v3457_v18 = vpop.f32.mrb[39].mxu1 }
 0x1e9   : > { %v3087_v16 = vmul.f32 -1.442695, %v5183_v40  ;;  %v5188_v41 = vadd.f32 %v5179_v60, %v2162_v10 }
 0x1eb   : > { %v5190_v50 = vpop.f32.mrb[96].mxu0  ;;  %3770 = vpow2.f32 %v3087_v16  ;;  %v3088_v9 = vmul.f32 -1.442695, %v5188_v41 }
 0x1ec   : > { %v2272_v0 = vpop.f32.mrb[97].mxu0  ;;  %v1886_v38 = vpop.f32.mrb[40].mxu1 }
 0x1ed   : > { %v5193_v61 = vpop.f32.mrb[98].mxu0  ;;  %3772 = vpow2.f32 %v3088_v9  ;;  %v2167_v24 = vadd.f32 %v5115_v34, %v1886_v38  ;;  %v3460_v44 = vpop.f32.mrb[41].mxu1 }
 0x1ee   : > { %v2275_v25 = vpop.f32.mrb[99].mxu0  ;;  %v1889_v37 = vpop.f32.mrb[42].mxu1 }
 0x1ef   : > { %v5197_v12 = vadd.f32 %v5179_v60, %v2167_v24  ;;  %v2170_v15 = vadd.f32 %v5119_v5, %v1889_v37  ;;  %v3461_v20 = vpop.f32.mrb[43].mxu1 }
 0x1f1   : > { %v3089_v22 = vmul.f32 -1.442695, %v5197_v12  ;;  %v5202_v42 = vadd.f32 %v5179_v60, %v2170_v15 }
 0x1f3   : > { %v5204_v27 = vpop.f32.mrb[100].mxu0  ;;  %3774 = vpow2.f32 %v3089_v22  ;;  %v3090_v14 = vmul.f32 -1.442695, %v5202_v42 }
 0x1f4   : > { %v2280_v30 = vpop.f32.mrb[101].mxu0 }
 0x1f5   : > { %v5207_v34 = vpop.f32.mrb[102].mxu0  ;;  %v1894_v19 = vpop.f32.mrb[44].mxu1  ;;  %3776 = vpow2.f32 %v3090_v14 }
 0x1f6   : > { %v2283_v36 = vpop.f32.mrb[103].mxu0  ;;  %v3771_v33 = vpop.eup %3770  ;;  %v2175_v5 = vadd.f32 %v5122_v4, %v1894_v19 }
 0x1f7   : > { %v3464_v8 = vpop.f32.mrb[45].mxu1  ;;  %v2463_v52 = vadd.f32 1.0, %v3771_v33  ;;  %v3773_v53 = vpop.eup %3772 }
 0x1f8   : > { %v1897_v31 = vpop.f32.mrb[46].mxu1  ;;  %v5211_v21 = vadd.f32 %v5179_v60, %v2175_v5  ;;  %v2464_v29 = vadd.f32 1.0, %v3773_v53 }
 0x1f9   : > { %v2178_v54 = vadd.f32 %v5126_v46, %v1897_v31  ;;  %v3465_v63 = vpop.f32.mrb[47].mxu1  ;;  %3778 = vrcp.f32 %v2463_v52 }
 0x1fa   : > { %v3091_v59 = vmul.f32 -1.442695, %v5211_v21  ;;  %3780 = vrcp.f32 %v2464_v29 }
 0x1fb   : > { %v5216_v17 = vadd.f32 %v5179_v60, %v2178_v54  ;;  %v5218_v23 = vpop.f32.mrb[104].mxu0 }
 0x1fc   : > { %v2288_v4 = vpop.f32.mrb[105].mxu0  ;;  %3782 = vpow2.f32 %v3091_v59 }
 0x1fd   : > { %v3092_v57 = vmul.f32 -1.442695, %v5216_v17  ;;  %v5221_v10 = vpop.f32.mrb[106].mxu0  ;;  %v3775_v46 = vpop.eup %3774 }
 0x1fe   : > { %v2291_v18 = vpop.f32.mrb[107].mxu0  ;;  %v1902_v16 = vpop.f32.mrb[48].mxu1  ;;  %v2465_v25 = vadd.f32 1.0, %v3775_v46 }
 0x1ff   : > { %3784 = vpow2.f32 %v3092_v57  ;;  %v2183_v0 = vadd.f32 %v5128_v62, %v1902_v16  ;;  %v3468_v9 = vpop.f32.mrb[49].mxu1  ;;  %v3777_v24 = vpop.eup %3776 }
 0x200   : > { %v1905_v38 = vpop.f32.mrb[50].mxu1  ;;  %3786 = vrcp.f32 %v2465_v25  ;;  %v2466_v20 = vadd.f32 1.0, %v3777_v24 }
 0x201   : > { %v5225_v44 = vadd.f32 %v5179_v60, %v2183_v0  ;;  %v2186_v37 = vadd.f32 %v5132_v43, %v1905_v38  ;;  %v3469_v15 = vpop.f32.mrb[51].mxu1 }
 0x202   : > { %3788 = vrcp.f32 %v2466_v20 }
 0x203   : > { %v3093_v22 = vmul.f32 -1.442695, %v5225_v44  ;;  %v5230_v30 = vadd.f32 %v5179_v60, %v2186_v37  ;;  %v5232_v14 = vpop.f32.mrb[108].mxu0  ;;  %v3779_v62 = vpop.eup %3778 }
 0x204   : > { %v2296_v36 = vpop.f32.mrb[109].mxu0  ;;  %v3781_v43 = vpop.eup %3780  ;;  %v2574_v31 = vmul.f32 %v3779_v62, %v5183_v40 }
 0x205   : > { %3790 = vpow2.f32 %v3093_v22  ;;  %v3094_v19 = vmul.f32 -1.442695, %v5230_v30  ;;  %v5237_v33 = vpop.f32.mrb[110].mxu0  ;;  %v2575_v53 = vmul.f32 %v3781_v43, %v5188_v41 }
 0x206   : > { %v2299_v5 = vpop.f32.mrb[111].mxu0  ;;  %v3783_v52 = vpop.eup %3782 }
 0x207   : > { %v1910_v8 = vpop.f32.mrb[52].mxu1  ;;  %3792 = vpow2.f32 %v3094_v19  ;;  %v2467_v29 = vadd.f32 1.0, %v3783_v52  ;;  %v3209_v57 = vpack.c.bf16 %v2575_v53, %v2574_v31 }
 0x208   : > { %v2191_v54 = vadd.f32 %v5134_v3, %v1910_v8  ;;  %v3472_v63 = vpop.f32.mrb[53].mxu1 }
 0x209   : > { %v1913_v59 = vpop.f32.mrb[54].mxu1  ;;  %v3785_v4 = vpop.eup %3784  ;;  %3794 = vrcp.f32 %v2467_v29  ;;  %3210 = vst [vmem:[%s5246_s13] sm:$0xff] %v3209_v57  }
 0x20a   : > { %v5243_v18 = vadd.f32 %v5179_v60, %v2191_v54  ;;  %v2194_v16 = vadd.f32 %v5138_v11, %v1913_v59  ;;  %v3473_v46 = vpop.f32.mrb[55].mxu1  ;;  %v2468_v0 = vadd.f32 1.0, %v3785_v4  ;;  %v3787_v9 = vpop.eup %3786 }
 0x20b   : > { %v5253_v41 = vpop.f32.mrb[112].mxu0  ;;  %v2576_v22 = vmul.f32 %v3787_v9, %v5197_v12 }
 0x20c   : > { %v3095_v40 = vmul.f32 -1.442695, %v5243_v18  ;;  %v5251_v3 = vadd.f32 %v5179_v60, %v2194_v16  ;;  %3796 = vrcp.f32 %v2468_v0  ;;  %v2304_v25 = vpop.f32.mrb[113].mxu0  ;;  %v3789_v24 = vpop.eup %3788 }
 0x20d   : > { %v2305_v38 = vpop.f32.mrb[114].mxu0  ;;  %v2577_v62 = vmul.f32 %v3789_v24, %v5202_v42 }
 0x20e   : > { %3798 = vpow2.f32 %v3095_v40  ;;  %v3096_v11 = vmul.f32 -1.442695, %v5251_v3  ;;  %v2306_v37 = vpop.f32.mrb[115].mxu0 }
 0x20f   : > { %v1918_v15 = vpop.f32.mrb[56].mxu1  ;;  %v3791_v20 = vpop.eup %3790  ;;  %v3214_v52 = vpack.c.bf16 %v2577_v62, %v2576_v22 }
 0x210   : > { %3800 = vpow2.f32 %v3096_v11  ;;  %v2199_v36 = vadd.f32 %v5140_v13, %v1918_v15  ;;  %v3476_v19 = vpop.f32.mrb[57].mxu1  ;;  %v2469_v43 = vadd.f32 1.0, %v3791_v20 }
 0x211   : > { %v1921_v5 = vpop.f32.mrb[58].mxu1  ;;  %v3793_v8 = vpop.eup %3792  ;;  %3296 = vst [vmem:[%s5246_s13 + $0x8] sm:$0xff] %v3214_v52  }
 0x212   : > { %v5260_v31 = vadd.f32 %v5179_v60, %v2199_v36  ;;  %v2202_v53 = vadd.f32 %v5142_v51, %v1921_v5  ;;  %v3477_v54 = vpop.f32.mrb[59].mxu1  ;;  %3802 = vrcp.f32 %v2469_v43  ;;  %v2470_v63 = vadd.f32 1.0, %v3793_v8 }
 0x213   : > { %v3795_v13 = vpop.eup %3794 }
 0x214   : > { %v3097_v12 = vmul.f32 -1.442695, %v5260_v31  ;;  %v5266_v42 = vadd.f32 %v5179_v60, %v2202_v53  ;;  %3804 = vrcp.f32 %v2470_v63  ;;  %v2578_v51 = vmul.f32 %v3795_v13, %v5211_v21 }
 0x216   : > { %3806 = vpow2.f32 %v3097_v12  ;;  %v3098_v29 = vmul.f32 -1.442695, %v5266_v42  ;;  %v3797_v59 = vpop.eup %3796 }
 0x217   : > { %v2579_v16 = vmul.f32 %v3797_v59, %v5216_v17 }
 0x218   : > { %v1926_v4 = vpop.f32.mrb[60].mxu1  ;;  %v3799_v57 = vpop.eup %3798  ;;  %3808 = vpow2.f32 %v3098_v29 }
 0x219   : > { %v2207_v46 = vadd.f32 %v5144_v39, %v1926_v4  ;;  %v3480_v0 = vpop.f32.mrb[61].mxu1  ;;  %v2471_v40 = vadd.f32 1.0, %v3799_v57  ;;  %v3219_v11 = vpack.c.bf16 %v2579_v16, %v2578_v51 }
 0x21a   : > { %v1929_v9 = vpop.f32.mrb[62].mxu1  ;;  %v3801_v25 = vpop.eup %3800 }
 0x21b   : > { %v5273_v38 = vadd.f32 %v5179_v60, %v2207_v46  ;;  %v2210_v24 = vadd.f32 %v5146_v26, %v1929_v9  ;;  %v3481_v37 = vpop.f32.mrb[63].mxu1  ;;  %3810 = vrcp.f32 %v2471_v40  ;;  %v2472_v15 = vadd.f32 1.0, %v3801_v25  ;;  %3297 = vst [vmem:[%s5246_s13 + $0x10] sm:$0xff] %v3219_v11  }
 0x21c   : > { %v3803_v39 = vpop.eup %3802 }
 0x21d   : > { %v3099_v21 = vmul.f32 -1.442695, %v5273_v38  ;;  %v5279_v17 = vadd.f32 %v5179_v60, %v2210_v24  ;;  %3812 = vrcp.f32 %v2472_v15  ;;  %v2580_v26 = vmul.f32 %v3803_v39, %v5225_v44 }
 0x21e   : > { %v3805_v22 = vpop.eup %3804 }
 0x21f   : > { %3814 = vpow2.f32 %v3099_v21  ;;  %v3100_v20 = vmul.f32 -1.442695, %v5279_v17  ;;  %v2581_v19 = vmul.f32 %v3805_v22, %v5230_v30 }
 0x220   : > { %v1934_v62 = vpop.f32.mrb[64].mxu1  ;;  %v3807_v36 = vpop.eup %3806 }
 0x221   : > { %3816 = vpow2.f32 %v3100_v20  ;;  %v2215_v43 = vadd.f32 %v5148_v1, %v1934_v62  ;;  %v3484_v5 = vpop.f32.mrb[65].mxu1  ;;  %v2473_v8 = vadd.f32 1.0, %v3807_v36  ;;  %v3224_v54 = vpack.c.bf16 %v2581_v19, %v2580_v26 }
 0x222   : > { %v1937_v52 = vpop.f32.mrb[66].mxu1  ;;  %v3809_v53 = vpop.eup %3808 }
 0x223   : > { %v5286_v63 = vadd.f32 %v5179_v60, %v2215_v43  ;;  %v2218_v12 = vadd.f32 %v5150_v28, %v1937_v52  ;;  %v3485_v13 = vpop.f32.mrb[67].mxu1  ;;  %3818 = vrcp.f32 %v2473_v8  ;;  %v2474_v29 = vadd.f32 1.0, %v3809_v53  ;;  %3298 = vst [vmem:[%s5246_s13 + $0x18] sm:$0xff] %v3224_v54  }
 0x225   : > { %v3101_v44 = vmul.f32 -1.442695, %v5286_v63  ;;  %v5292_v30 = vadd.f32 %v5179_v60, %v2218_v12  ;;  %v3811_v1 = vpop.eup %3810  ;;  %3820 = vrcp.f32 %v2474_v29 }
 0x226   : > { %v2582_v28 = vmul.f32 %v3811_v1, %v5243_v18 }
 0x227   : > { %3822 = vpow2.f32 %v3101_v44  ;;  %v3102_v59 = vmul.f32 -1.442695, %v5292_v30  ;;  %v3813_v4 = vpop.eup %3812 }
 0x228   : > { %v1942_v57 = vpop.f32.mrb[68].mxu1  ;;  %v2583_v16 = vmul.f32 %v3813_v4, %v5251_v3 }
 0x229   : > { %v3815_v51 = vpop.eup %3814  ;;  %3824 = vpow2.f32 %v3102_v59  ;;  %v2223_v46 = vadd.f32 %v5152_v32, %v1942_v57  ;;  %v3488_v0 = vpop.f32.mrb[69].mxu1 }
 0x22a   : > { %v2475_v40 = vadd.f32 1.0, %v3815_v51  ;;  %v1945_v9 = vpop.f32.mrb[70].mxu1  ;;  %v3229_v11 = vpack.c.bf16 %v2583_v16, %v2582_v28 }
 0x22b   : > { %v3817_v25 = vpop.eup %3816  ;;  %v5299_v24 = vadd.f32 %v5179_v60, %v2223_v46  ;;  %v2226_v37 = vadd.f32 %v5154_v35, %v1945_v9  ;;  %v3489_v15 = vpop.f32.mrb[71].mxu1 }
 0x22c   : > { %3826 = vrcp.f32 %v2475_v40  ;;  %v2476_v21 = vadd.f32 1.0, %v3817_v25  ;;  %3299 = vst [vmem:[%s5246_s13 + $0x20] sm:$0xff] %v3229_v11  }
 0x22d   : > { %v3103_v18 = vmul.f32 -1.442695, %v5299_v24  ;;  %v5305_v3 = vadd.f32 %v5179_v60, %v2226_v37  ;;  %v3819_v32 = vpop.eup %3818 }
 0x22e   : > { %3828 = vrcp.f32 %v2476_v21  ;;  %v2584_v35 = vmul.f32 %v3819_v32, %v5260_v31 }
 0x22f   : > { %3830 = vpow2.f32 %v3103_v18  ;;  %v3104_v39 = vmul.f32 -1.442695, %v5305_v3  ;;  %v3821_v20 = vpop.eup %3820 }
 0x230   : > { %v1950_v22 = vpop.f32.mrb[72].mxu1  ;;  %v2585_v36 = vmul.f32 %v3821_v20, %v5266_v42 }
 0x231   : > { %v3823_v62 = vpop.eup %3822  ;;  %3832 = vpow2.f32 %v3104_v39  ;;  %v2231_v26 = vadd.f32 %v5156_v45, %v1950_v22  ;;  %v3492_v19 = vpop.f32.mrb[73].mxu1 }
 0x232   : > { %v2477_v43 = vadd.f32 1.0, %v3823_v62  ;;  %v1953_v5 = vpop.f32.mrb[74].mxu1  ;;  %v3234_v52 = vpack.c.bf16 %v2585_v36, %v2584_v35 }
 0x233   : > { %v3825_v8 = vpop.eup %3824  ;;  %v5312_v53 = vadd.f32 %v5179_v60, %v2231_v26  ;;  %v2234_v54 = vadd.f32 %v5158_v2, %v1953_v5  ;;  %v3493_v12 = vpop.f32.mrb[75].mxu1 }
 0x234   : > { %3834 = vrcp.f32 %v2477_v43  ;;  %v2478_v13 = vadd.f32 1.0, %v3825_v8  ;;  %3300 = vst [vmem:[%s5246_s13 + $0x28] sm:$0xff] %v3234_v52  }
 0x235   : > { %v3105_v31 = vmul.f32 -1.442695, %v5312_v53  ;;  %v5318_v42 = vadd.f32 %v5179_v60, %v2234_v54 }
 0x236   : > { %v3827_v45 = vpop.eup %3826  ;;  %3836 = vrcp.f32 %v2478_v13 }
 0x237   : > { %3838 = vpow2.f32 %v3105_v31  ;;  %v3106_v29 = vmul.f32 -1.442695, %v5318_v42  ;;  %v2586_v2 = vmul.f32 %v3827_v45, %v5273_v38 }
 0x238   : > { %v3829_v44 = vpop.eup %3828  ;;  %v1958_v1 = vpop.f32.mrb[76].mxu1 }
 0x239   : > { %v3831_v59 = vpop.eup %3830  ;;  %v2587_v4 = vmul.f32 %v3829_v44, %v5279_v17  ;;  %3840 = vpow2.f32 %v3106_v29  ;;  %v2239_v57 = vadd.f32 %v5160_v49, %v1958_v1  ;;  %v3496_v51 = vpop.f32.mrb[77].mxu1 }
 0x23a   : > { %v2479_v28 = vadd.f32 1.0, %v3831_v59  ;;  %v1961_v16 = vpop.f32.mrb[78].mxu1 }
 0x23b   : > { %v3833_v46 = vpop.eup %3832  ;;  %v3239_v0 = vpack.c.bf16 %v2587_v4, %v2586_v2  ;;  %v5325_v40 = vadd.f32 %v5179_v60, %v2239_v57  ;;  %v2242_v9 = vadd.f32 %v5162_v6, %v1961_v16  ;;  %v3497_v25 = vpop.f32.mrb[79].mxu1 }
 0x23c   : > { %3842 = vrcp.f32 %v2479_v28  ;;  %v2480_v11 = vadd.f32 1.0, %v3833_v46 }
 0x23d   : > { %3301 = vst [vmem:[%s5246_s13 + $0x30] sm:$0xff] %v3239_v0   ;;  %v3107_v38 = vmul.f32 -1.442695, %v5325_v40  ;;  %v5331_v17 = vadd.f32 %v5179_v60, %v2242_v9 }
 0x23e   : > { %v3835_v49 = vpop.eup %3834  ;;  %3844 = vrcp.f32 %v2480_v11 }
 0x23f   : > { %3846 = vpow2.f32 %v3107_v38  ;;  %v3108_v37 = vmul.f32 -1.442695, %v5331_v17  ;;  %v2588_v6 = vmul.f32 %v3835_v49, %v5286_v63 }
 0x240   : > { %v3837_v15 = vpop.eup %3836  ;;  %v1966_v21 = vpop.f32.mrb[80].mxu1 }
 0x241   : > { %v3839_v18 = vpop.eup %3838  ;;  %v2589_v32 = vmul.f32 %v3837_v15, %v5292_v30  ;;  %3848 = vpow2.f32 %v3108_v37  ;;  %v2247_v39 = vadd.f32 %v5164_v47, %v1966_v21  ;;  %v3500_v20 = vpop.f32.mrb[81].mxu1 }
 0x242   : > { %v2481_v22 = vadd.f32 1.0, %v3839_v18  ;;  %v1969_v62 = vpop.f32.mrb[82].mxu1 }
 0x243   : > { %v3841_v35 = vpop.eup %3840  ;;  %v3244_v36 = vpack.c.bf16 %v2589_v32, %v2588_v6  ;;  %v5338_v26 = vadd.f32 %v5179_v60, %v2247_v39  ;;  %v2250_v19 = vadd.f32 %v5166_v7, %v1969_v62  ;;  %v3501_v43 = vpop.f32.mrb[83].mxu1 }
 0x244   : > { %3850 = vrcp.f32 %v2481_v22  ;;  %v2482_v5 = vadd.f32 1.0, %v3841_v35 }
 0x245   : > { %3302 = vst [vmem:[%s5246_s13 + $0x38] sm:$0xff] %v3244_v36   ;;  %v3109_v63 = vmul.f32 -1.442695, %v5338_v26  ;;  %v5344_v30 = vadd.f32 %v5179_v60, %v2250_v19 }
 0x246   : > { %v3843_v47 = vpop.eup %3842  ;;  %3852 = vrcp.f32 %v2482_v5 }
 0x247   : > { %3854 = vpow2.f32 %v3109_v63  ;;  %v3110_v8 = vmul.f32 -1.442695, %v5344_v30  ;;  %v2590_v7 = vmul.f32 %v3843_v47, %v5299_v24 }
 0x248   : > { %v3845_v52 = vpop.eup %3844  ;;  %v1974_v54 = vpop.f32.mrb[84].mxu1 }
 0x249   : > { %v3847_v12 = vpop.eup %3846  ;;  %v2591_v13 = vmul.f32 %v3845_v52, %v5305_v3  ;;  %3856 = vpow2.f32 %v3110_v8  ;;  %v2255_v31 = vadd.f32 %v5168_v55, %v1974_v54  ;;  %v3504_v45 = vpop.f32.mrb[85].mxu1 }
 0x24a   : > { %v2483_v29 = vadd.f32 1.0, %v3847_v12  ;;  %v1977_v44 = vpop.f32.mrb[86].mxu1 }
 0x24b   : > { %v3849_v1 = vpop.eup %3848  ;;  %v3249_v59 = vpack.c.bf16 %v2591_v13, %v2590_v7  ;;  %v5351_v2 = vadd.f32 %v5179_v60, %v2255_v31  ;;  %v2258_v4 = vadd.f32 %v5170_v48, %v1977_v44  ;;  %v3505_v57 = vpop.f32.mrb[87].mxu1 }
 0x24c   : > { %3858 = vrcp.f32 %v2483_v29  ;;  %v2484_v51 = vadd.f32 1.0, %v3849_v1 }
 0x24d   : > { %3303 = vst [vmem:[%s5246_s13 + $0x40] sm:$0xff] %v3249_v59   ;;  %v3111_v24 = vmul.f32 -1.442695, %v5351_v2  ;;  %v5357_v3 = vadd.f32 %v5179_v60, %v2258_v4 }
 0x24e   : > { %v3851_v55 = vpop.eup %3850  ;;  %3860 = vrcp.f32 %v2484_v51 }
 0x24f   : > { %3862 = vpow2.f32 %v3111_v24  ;;  %v3112_v28 = vmul.f32 -1.442695, %v5357_v3  ;;  %v2592_v48 = vmul.f32 %v3851_v55, %v5312_v53 }
 0x250   : > { %v3853_v16 = vpop.eup %3852  ;;  %v1982_v46 = vpop.f32.mrb[88].mxu1 }
 0x251   : > { %v3855_v0 = vpop.eup %3854  ;;  %v2593_v9 = vmul.f32 %v3853_v16, %v5318_v42  ;;  %3864 = vpow2.f32 %v3112_v28  ;;  %v2263_v25 = vadd.f32 %v5172_v58, %v1982_v46  ;;  %v3508_v11 = vpop.f32.mrb[89].mxu1 }
 0x252   : > { %v2485_v38 = vadd.f32 1.0, %v3855_v0  ;;  %v1985_v49 = vpop.f32.mrb[90].mxu1 }
 0x253   : > { %v3857_v37 = vpop.eup %3856  ;;  %v3254_v15 = vpack.c.bf16 %v2593_v9, %v2592_v48  ;;  %v5364_v21 = vadd.f32 %v5179_v60, %v2263_v25  ;;  %v2266_v18 = vadd.f32 %v5174_v56, %v1985_v49  ;;  %v3509_v6 = vpop.f32.mrb[91].mxu1 }
 0x254   : > { %3866 = vrcp.f32 %v2485_v38  ;;  %v2486_v32 = vadd.f32 1.0, %v3857_v37 }
 0x255   : > { %3304 = vst [vmem:[%s5246_s13 + $0x48] sm:$0xff] %v3254_v15   ;;  %v3113_v53 = vmul.f32 -1.442695, %v5364_v21  ;;  %v5370_v42 = vadd.f32 %v5179_v60, %v2266_v18 }
 0x256   : > { %v3859_v58 = vpop.eup %3858  ;;  %3868 = vrcp.f32 %v2486_v32 }
 0x257   : > { %3870 = vpow2.f32 %v3113_v53  ;;  %v3114_v39 = vmul.f32 -1.442695, %v5370_v42  ;;  %v2594_v56 = vmul.f32 %v3859_v58, %v5325_v40 }
 0x258   : > { %v3861_v20 = vpop.eup %3860  ;;  %v1990_v22 = vpop.f32.mrb[92].mxu1 }
 0x259   : > { %v3863_v62 = vpop.eup %3862  ;;  %v2595_v35 = vmul.f32 %v3861_v20, %v5331_v17  ;;  %3872 = vpow2.f32 %v3114_v39  ;;  %v2271_v36 = vadd.f32 %v5190_v50, %v1990_v22  ;;  %v3512_v19 = vpop.f32.mrb[93].mxu1 }
 0x25a   : > { %v2487_v43 = vadd.f32 1.0, %v3863_v62  ;;  %v1993_v5 = vpop.f32.mrb[94].mxu1 }
 0x25b   : > { %v3865_v63 = vpop.eup %3864  ;;  %v3259_v47 = vpack.c.bf16 %v2595_v35, %v2594_v56  ;;  %v5377_v8 = vadd.f32 %v5179_v60, %v2271_v36  ;;  %v2274_v52 = vadd.f32 %v5193_v61, %v1993_v5  ;;  %v3513_v54 = vpop.f32.mrb[95].mxu1 }
 0x25c   : > { %3874 = vrcp.f32 %v2487_v43  ;;  %v2488_v12 = vadd.f32 1.0, %v3865_v63 }
 0x25d   : > { %3305 = vst [vmem:[%s5246_s13 + $0x50] sm:$0xff] %v3259_v47   ;;  %v3115_v40 = vmul.f32 -1.442695, %v5377_v8  ;;  %v5383_v17 = vadd.f32 %v5179_v60, %v2274_v52 }
 0x25e   : > { %v3867_v50 = vpop.eup %3866  ;;  %3876 = vrcp.f32 %v2488_v12 }
 0x25f   : > { %3878 = vpow2.f32 %v3115_v40  ;;  %v3116_v7 = vmul.f32 -1.442695, %v5383_v17  ;;  %v2596_v61 = vmul.f32 %v3867_v50, %v5338_v26 }
 0x260   : > { %v3869_v13 = vpop.eup %3868  ;;  %v1998_v31 = vpop.f32.mrb[96].mxu1 }
 0x261   : > { %v3871_v45 = vpop.eup %3870  ;;  %v2597_v29 = vmul.f32 %v3869_v13, %v5344_v30  ;;  %3880 = vpow2.f32 %v3116_v7  ;;  %v2279_v44 = vadd.f32 %v5204_v27, %v1998_v31  ;;  %v3516_v1 = vpop.f32.mrb[97].mxu1 }
 0x262   : > { %v2489_v59 = vadd.f32 1.0, %v3871_v45  ;;  %v2001_v4 = vpop.f32.mrb[98].mxu1 }
 0x263   : > { %v3873_v57 = vpop.eup %3872  ;;  %v3264_v51 = vpack.c.bf16 %v2597_v29, %v2596_v61  ;;  %v5390_v24 = vadd.f32 %v5179_v60, %v2279_v44  ;;  %v2282_v55 = vadd.f32 %v5207_v34, %v2001_v4  ;;  %v3517_v28 = vpop.f32.mrb[99].mxu1 }
 0x264   : > { %3882 = vrcp.f32 %v2489_v59  ;;  %v2490_v16 = vadd.f32 1.0, %v3873_v57 }
 0x265   : > { %3306 = vst [vmem:[%s5246_s13 + $0x58] sm:$0xff] %v3264_v51   ;;  %v3117_v26 = vmul.f32 -1.442695, %v5390_v24  ;;  %v5396_v30 = vadd.f32 %v5179_v60, %v2282_v55 }
 0x266   : > { %v3875_v27 = vpop.eup %3874  ;;  %3884 = vrcp.f32 %v2490_v16 }
 0x267   : > { %3886 = vpow2.f32 %v3117_v26  ;;  %v3118_v46 = vmul.f32 -1.442695, %v5396_v30  ;;  %v2598_v34 = vmul.f32 %v3875_v27, %v5351_v2 }
 0x268   : > { %v3877_v0 = vpop.eup %3876  ;;  %v2006_v48 = vpop.f32.mrb[100].mxu1 }
 0x269   : > { %v3879_v9 = vpop.eup %3878  ;;  %v2599_v25 = vmul.f32 %v3877_v0, %v5357_v3  ;;  %3888 = vpow2.f32 %v3118_v46  ;;  %v2287_v11 = vadd.f32 %v5218_v23, %v2006_v48  ;;  %v3520_v38 = vpop.f32.mrb[101].mxu1 }
 0x26a   : > { %v2491_v49 = vadd.f32 1.0, %v3879_v9  ;;  %v2009_v37 = vpop.f32.mrb[102].mxu1 }
 0x26b   : > { %v3881_v15 = vpop.eup %3880  ;;  %v3269_v18 = vpack.c.bf16 %v2599_v25, %v2598_v34  ;;  %v5403_v6 = vadd.f32 %v5179_v60, %v2287_v11  ;;  %v2290_v32 = vadd.f32 %v5221_v10, %v2009_v37  ;;  %v3521_v53 = vpop.f32.mrb[103].mxu1 }
 0x26c   : > { %3890 = vrcp.f32 %v2491_v49  ;;  %v2492_v58 = vadd.f32 1.0, %v3881_v15 }
 0x26d   : > { %3307 = vst [vmem:[%s5246_s13 + $0x60] sm:$0xff] %v3269_v18   ;;  %v3119_v2 = vmul.f32 -1.442695, %v5403_v6  ;;  %v5409_v3 = vadd.f32 %v5179_v60, %v2290_v32 }
 0x26e   : > { %v3883_v23 = vpop.eup %3882  ;;  %3892 = vrcp.f32 %v2492_v58 }
 0x26f   : > { %3894 = vpow2.f32 %v3119_v2  ;;  %v3120_v39 = vmul.f32 -1.442695, %v5409_v3  ;;  %v2600_v10 = vmul.f32 %v3883_v23, %v5364_v21 }
 0x270   : > { %v3885_v20 = vpop.eup %3884  ;;  %v2014_v22 = vpop.f32.mrb[104].mxu1 }
 0x271   : > { %v3887_v62 = vpop.eup %3886  ;;  %v2601_v56 = vmul.f32 %v3885_v20, %v5370_v42  ;;  %3896 = vpow2.f32 %v3120_v39  ;;  %v2295_v35 = vadd.f32 %v5232_v14, %v2014_v22  ;;  %v3524_v36 = vpop.f32.mrb[105].mxu1 }
 0x272   : > { %v2493_v19 = vadd.f32 1.0, %v3887_v62  ;;  %v2017_v43 = vpop.f32.mrb[106].mxu1 }
 0x273   : > { %v3889_v5 = vpop.eup %3888  ;;  %v3274_v63 = vpack.c.bf16 %v2601_v56, %v2600_v10  ;;  %v2349_v47 = vadd.f32 %v5179_v60, %v2295_v35  ;;  %v2298_v52 = vadd.f32 %v5237_v33, %v2017_v43  ;;  %v3525_v54 = vpop.f32.mrb[107].mxu1 }
 0x274   : > { %3898 = vrcp.f32 %v2493_v19  ;;  %v2494_v12 = vadd.f32 1.0, %v3889_v5 }
 0x275   : > { %3308 = vst [vmem:[%s5246_s13 + $0x68] sm:$0xff] %v3274_v63   ;;  %v3121_v40 = vmul.f32 -1.442695, %v2349_v47  ;;  %v2350_v21 = vadd.f32 %v5179_v60, %v2298_v52 }
 0x276   : > { %v3891_v42 = vpop.eup %3890  ;;  %3900 = vrcp.f32 %v2494_v12 }
 0x277   : > { %3902 = vpow2.f32 %v3121_v40  ;;  %v3122_v14 = vmul.f32 -1.442695, %v2350_v21  ;;  %v2602_v31 = vmul.f32 %v3891_v42, %v5377_v8 }
 0x278   : > { %v3893_v50 = vpop.eup %3892  ;;  %v2022_v7 = vpop.f32.mrb[108].mxu1 }
 0x279   : > { %v3895_v13 = vpop.eup %3894  ;;  %v2603_v45 = vmul.f32 %v3893_v50, %v5383_v17  ;;  %3904 = vpow2.f32 %v3122_v14  ;;  %v2303_v33 = vadd.f32 %v5253_v41, %v2022_v7  ;;  %v3528_v61 = vpop.f32.mrb[109].mxu1 }
 0x27a   : > { %v2495_v29 = vadd.f32 1.0, %v3895_v13  ;;  %v2025_v44 = vpop.f32.mrb[110].mxu1 }
 0x27b   : > { %v3897_v1 = vpop.eup %3896  ;;  %v3279_v59 = vpack.c.bf16 %v2603_v45, %v2602_v31  ;;  %v2351_v4 = vadd.f32 %v5179_v60, %v2303_v33  ;;  %v3529_v57 = vpop.f32.mrb[111].mxu1 }
 0x27c   : > { %3906 = vrcp.f32 %v2495_v29  ;;  %v2496_v51 = vadd.f32 1.0, %v3897_v1 }
 0x27d   : > { %3309 = vst [vmem:[%s5246_s13 + $0x70] sm:$0xff] %v3279_v59   ;;  %v3123_v55 = vmul.f32 -1.442695, %v2351_v4 }
 0x27e   : > { %v3899_v28 = vpop.eup %3898  ;;  %3908 = vrcp.f32 %v2496_v51 }
 0x27f   : > { %3910 = vpow2.f32 %v3123_v55  ;;  %v2604_v41 = vmul.f32 %v3899_v28, %v5390_v24 }
 0x280   : > { %v3901_v8 = vpop.eup %3900 }
 0x281   : > { %v3903_v17 = vpop.eup %3902  ;;  %v2605_v16 = vmul.f32 %v3901_v8, %v5396_v30 }
 0x282   : > { %v2497_v26 = vadd.f32 1.0, %v3903_v17 }
 0x283   : > { %v3905_v27 = vpop.eup %3904  ;;  %v3284_v46 = vpack.c.bf16 %v2605_v16, %v2604_v41 }
 0x284   : > { %3912 = vrcp.f32 %v2497_v26  ;;  %v2498_v60 = vadd.f32 1.0, %v3905_v27 }
 0x285   : > { %3310 = vst [vmem:[%s5246_s13 + $0x78] sm:$0xff] %v3284_v46  }
 0x286   : > { %v3907_v0 = vpop.eup %3906  ;;  %3914 = vrcp.f32 %v2498_v60 }
 0x287   : > { %v2606_v34 = vmul.f32 %v3907_v0, %v5403_v6 }
 0x288   : > { %v3909_v48 = vpop.eup %3908 }
 0x289   : > { %v3911_v9 = vpop.eup %3910  ;;  %v2607_v24 = vmul.f32 %v3909_v48, %v5409_v3 }
 0x28a   : > { %v2499_v25 = vadd.f32 1.0, %v3911_v9 }
 0x28b   : > { %v3289_v30 = vpack.c.bf16 %v2607_v24, %v2606_v34 }
 0x28c   : > { %3916 = vrcp.f32 %v2499_v25 }
 0x28d   : > { %3311 = vst [vmem:[%s5246_s13 + $0x80] sm:$0xff] %v3289_v30  }
 0x28e   : > { %v3913_v11 = vpop.eup %3912 }
 0x28f   : > { %v2608_v49 = vmul.f32 %v3913_v11, %v2349_v47 }
 0x290   : > { %v3915_v38 = vpop.eup %3914 }
 0x291   : > { %v2609_v37 = vmul.f32 %v3915_v38, %v2350_v21 }
 0x293   : > { %v3294_v15 = vpack.c.bf16 %v2609_v37, %v2608_v49 }
 0x295   : > { %3312 = vst [vmem:[%s5246_s13 + $0x88] sm:$0xff] %v3294_v15   ;;  %2804 = sbr.rel (!%p4073_p5) target bundleno = 696 (0x2b8), region = 56 }
 0x296   : > { %v3917_v18 = vpop.eup %3916 }
 0x297   : > { %v2610_v32 = vmul.f32 %v3917_v18, %v2351_v4 }
 0x299   : > { %v3204_v53 = vpack.c.bf16 %v2610_v32, %v2610_v32 }
 0x29b   : > { %2796 = vst [vmem:[%s5246_s13 + $0x90] sm:$0xf] %v3204_v53 }
 0x29c   : > { %s5593_s20 = smov (!%p2807_p11, %s2806_s20), 37 }
 0x29d   : > { %s5439_s23 = sshll.u32 %s5593_s20, 6 }
 0x29e   : > { %s2811_s25 = ssub.s32 2368, %s5439_s23 }
 0x29f   : > { %2812 = vsyncadd %s5434_s17, %s2811_s25  ;;  %p3162_p12 = scmp.ne.s32.totalorder %s5439_s23, 0  ;;  %s3205_s18 = smul.u32 2368, %s4056_s9 }
 0x2a0   : > { %s2817_s21 = sshll.u32 %s5246_s13, 4  ;;  %s3987_s24 = smov [#allocation2]   ;;  %s5451_s21 = int_to_ptr.vmem [resolvable:$true] %s2817_s21 }
 0x2a1   : > { %s5449_s12 = scalar_lea.hbm %s5503_s8, %s3205_s18  ;;  %s3919_s19 = scalar_lea.vmem %s5451_s21, %s5439_s23 }
 0x2a2   : > { %p3920_p13 = scmp.ne.s32.totalorder %s5451_s21, %s3919_s19  ;;  %s3923_s26 = sshll.u32 %s3987_s24, 4  ;;  %s3924_s26 = int_to_ptr.vmem [resolvable:$false] %s3923_s26 }
 0x2a3   : > { %s3925_s9 = scalar_lea.vmem %s3924_s26, 4736  ;;  %p3926_p2 = scmp.lt.s32.totalorder %s5451_s21, %s3924_s26 }
 0x2a4   : > { %p3921_p0 = pnand %p3920_p13, %p3162_p12  ;;  %p3927_p3 = scmp.lt.s32.totalorder %s3925_s9, %s3919_s19 }
 0x2a6   : > { %p3922_p1 = pneg %p3921_p0  ;;  %p3928_p4 = por %p3927_p3, %p3926_p2 }
 0x2a8   : > { %p3929_p5 = pnand %p3928_p4, %p3922_p1 }
 0x2aa   : > { %3932 = shalt.err (!%p3929_p5)
}
 0x2ab   : > { %s3933_s10 = scalar_lea.hbm %s5449_s12, %s5439_s23  ;;  %s3937_s25 = scalar_lea.hbm %s5503_s8, 2432 }
 0x2ac   : > { %p3934_p7 = scmp.ne.s32.totalorder %s5449_s12, %s3933_s10  ;;  %p3938_p10 = scmp.lt.u32.totalorder %s5449_s12, %s5503_s8 }
 0x2ad   : > { %p3939_p11 = scmp.lt.u32.totalorder %s3937_s25, %s3933_s10  ;;  %p3941_p0 = scmp.lt.u32.totalorder %s3933_s10, %s5449_s12 }
 0x2ae   : > { %p3935_p8 = pnand %p3934_p7, %p3162_p12 }
 0x2af   : > { %p3940_p13 = por %p3939_p11, %p3938_p10 }
 0x2b0   : > { %p3936_p9 = pneg %p3935_p8 }
 0x2b1   : > { %p3942_p1 = por %p3941_p0, %p3940_p13 }
 0x2b3   : > { %p3943_p2 = pnand %p3942_p1, %p3936_p9 }
 0x2b5   : > { %3946 = shalt.err (!%p3943_p2)
}
 0x2b6   : > { %s3988_s22 = smov 64   ;;  %s3989_s19 = smov 4  }
 0x2b7   : > { %2823 = dma.vmem_to_hbm [thread:$0]  (%p3162_p12), %s5451_s21, %s5439_s23, %s5449_s12, %s5434_s17, %s3988_s22, %s3988_s22, %s3989_s19  }
 0x2b8 PF: > { %p3538_p3 = scmp.ge.s32.totalorder %s3981_s30, 2  ;;  %s2832_s24 = sand.u32 1, %s3969_s27  }
 0x2b9   : > { %s2833_s26 = scalar_lea.sflag [#allocation3], %s2832_s24 }
 0x2ba   : > { %p3535_p4 = pnand %p3538_p3, %p4077_p6 }
 0x2bc   : > { %3964 = dma.done.wait (!%p3535_p4), %s2833_s26, 2368  }
 0x2bd   : > { %3966 = vsyncadd (!%p3535_p4), %s2833_s26, 4294964928  ;;  %p18_p5 = scmp.ge.s32.totalorder %s4060_s11, 4   ;;  %s5588_s27 = smov %s3973_s28 }
 0x2be   : > { %s5589_s28 = smov %s3977_s29  ;;  %s5590_s29 = smov %s4071_s14 }
 0x2bf   : > { %s5591_s30 = smov %s4060_s11  ;;  %20 = sbr.rel (!%p18_p5) target bundleno = 3 (0x3), region = 93 }
 0x2c6   :  { %2838 = vsyncpa [#allocation3], 1 }
 0x2c7   :  { %2840 = vsyncpa [#allocation3 + $0x1], 1 }

</bundles_post_ra>
